<compile_context>
chip_gen: v7x
topology: tpu7x:2x2x1
jax: 0.10.0
libtpu: 0.0.40
codegen_flags: <defaults>
</compile_context>

<pallas_src>
import functools

import jax
import jax.numpy as jnp
from jax import lax
from jax.experimental import pallas as pl
from jax.experimental.pallas import tpu as pltpu

OBJ_DIS_FEATS = 2048
HIDDEN = OBJ_DIS_FEATS // 2   # 1024
N_BINS = 10
N_OUT = 10
BETA = 10000.0


def _round_up(x, m):
    return (x + m - 1) // m * m


def _global_obj_disnet_kernel(x_ref, w_ref, b_ref, o_ref):
    # x_ref : [N_BINS, TB, 2048]  bins leading, features on lanes
    # w_ref : [N_OUT, 2048]       folded weight (w2 @ w1), VMEM-resident across grid
    # b_ref : [1, N_OUT]          folded bias   (w2 @ b1 + b2)
    # o_ref : [TB, N_OUT]

    # Pass 1: running max over the 10 (TB, 2048) bin slices (pure VPU, no XLU).
    m = x_ref[0]
    for k in range(1, N_BINS):
        m = jnp.maximum(m, x_ref[k])

    # Pass 2: accumulate softmax denominator and arange-weighted numerator.
    # Only a few [TB, 2048] accumulators are live; p is never materialized as a
    # [TB, N_BINS, 2048] block.
    denom = jnp.zeros_like(m)
    num = jnp.zeros_like(m)
    for k in range(N_BINS):
        p = jnp.exp((x_ref[k] - m) * BETA)
        denom = denom + p
        if k > 0:
            num = num + p * float(k)

    feat = num / denom                                   # exact divide, [TB, 2048]

    # Folded linear 2048 -> 10, contracting the lane axis of both operands
    # (weight stays [10, 2048] so it never pads lanes 10 -> 128 in VMEM).
    y = lax.dot_general(
        feat, w_ref[...],
        dimension_numbers=(((1,), (1,)), ((), ())),
        preferred_element_type=jnp.float32,
    )
    y = y + b_ref[...]                                   # broadcast [1, N_OUT]
    o_ref[...] = jax.nn.sigmoid(y).astype(o_ref.dtype)


def fold_params(w1, b1, w2, b2):
    """Fold the two linears (done once at parameter-load time, not per forward).

    h = feat @ w1.T + b1 ; y = h @ w2.T + b2
      ==> y = feat @ (w2 @ w1).T + (w2 @ b1 + b2)
    """
    w_folded_t = jnp.dot(w2, w1, precision=lax.Precision.HIGHEST)          # [10, 2048]
    b_folded = (jnp.dot(w2, b1, precision=lax.Precision.HIGHEST) + b2)     # [10]
    return w_folded_t, b_folded.reshape(1, N_OUT)


def _pick_batch_tile(b, max_tile_b):
    # Multiple of 8 (sublanes); aim for >=2 grid steps so v7x megacore and the
    # input/output pipeline both have work.
    target = _round_up(max(-(-b // 2), 1), 8)
    return max(8, min(max_tile_b, target))


def _vmem_limit_bytes(tb):
    x_block = N_BINS * tb * OBJ_DIS_FEATS * 4            # one input block
    temps = 8 * tb * OBJ_DIS_FEATS * 4                    # m / denom / num / feat / p (+margin)
    w_bufs = 2 * (N_OUT * OBJ_DIS_FEATS * 4 + 8 * 128 * 4)
    out_bufs = 2 * tb * 128 * 4
    limit = 2 * x_block + temps + w_bufs + out_bufs + (4 << 20)
    return int(min(limit, 60 * 1024 * 1024))              # stay under v7x 64 MiB physical


def global_obj_disnet_forward(data, w_folded_t, b_folded, *, max_tile_b=64):
    """data: [B, 2048, 10]; w_folded_t: [10, 2048]; b_folded: [1, 10]. Returns [B, 10]."""
    B = data.shape[0]
    assert data.shape == (B, OBJ_DIS_FEATS, N_BINS)

    # Bins-leading, feature-on-lanes layout.  With allow_input_fusion this
    # transpose can fold into the pallas_call operand instead of a separate HBM
    # round trip.
    # TODO(synk): if the producer can emit activations directly as [10, B, 2048]
    # (or stream them as bf16 after an accuracy check), drop this transpose.
    x_t = jnp.transpose(data, (2, 0, 1))                  # [10, B, 2048]

    TB = _pick_batch_tile(B, max_tile_b)
    grid = (pl.cdiv(B, TB),)                              # ragged last block, no jnp.pad

    out = pl.pallas_call(
        _global_obj_disnet_kernel,
        out_shape=jax.ShapeDtypeStruct((B, N_OUT), jnp.float32),
        grid=grid,
        in_specs=[
            pl.BlockSpec((N_BINS, TB, OBJ_DIS_FEATS), lambda i: (0, i, 0)),  # x: blocked on batch
            pl.BlockSpec((N_OUT, OBJ_DIS_FEATS), lambda i: (0, 0)),          # folded W: resident
            pl.BlockSpec((1, N_OUT), lambda i: (0, 0)),                      # folded b: resident
        ],
        out_specs=pl.BlockSpec((TB, N_OUT), lambda i: (i, 0)),
        compiler_params=pltpu.CompilerParams(
            dimension_semantics=("parallel",),             # batch axis -> megacore on v7x
            allow_input_fusion=[True, False, False],       # let XLA fuse the transpose into operand 0
            vmem_limit_bytes=_vmem_limit_bytes(TB),
        ),
    )(x_t, w_folded_t, b_folded)

    return out


def _init_linear(key, out_features, in_features):
    # PyTorch nn.Linear default init: U(-1/sqrt(fan_in), 1/sqrt(fan_in))
    kw, kb = jax.random.split(key)
    bound = 1.0 / jnp.sqrt(jnp.float32(in_features))
    w = jax.random.uniform(kw, (out_features, in_features), jnp.float32, -bound, bound)
    b = jax.random.uniform(kb, (out_features,), jnp.float32, -bound, bound)
    return w, b


def _reference_forward(data, w1, b1, w2, b2):
    # Straight (unfolded) port of the PyTorch forward, HIGHEST-precision matmuls.
    p = jax.nn.softmax(data * BETA, axis=-1)
    feat = jnp.sum(p * jnp.arange(N_BINS, dtype=jnp.float32), axis=-1)
    h = jnp.dot(feat, w1.T, precision=lax.Precision.HIGHEST) + b1
    y = jnp.dot(h, w2.T, precision=lax.Precision.HIGHEST) + b2
    return jax.nn.sigmoid(y)


if __name__ == "__main__":
    key = jax.random.PRNGKey(0)
    k_data, k_l1, k_l2 = jax.random.split(key, 3)

    B = 8
    data = jax.random.normal(k_data, (B, OBJ_DIS_FEATS, N_BINS), jnp.float32)

    w1, b1 = _init_linear(k_l1, HIDDEN, OBJ_DIS_FEATS)    # [1024, 2048], [1024]
    w2, b2 = _init_linear(k_l2, N_OUT, HIDDEN)            # [10, 1024],   [10]

    # Fold once (parameter-load time), not inside the per-call forward.
    w_folded_t, b_folded = fold_params(w1, b1, w2, b2)
    w_folded_t = jax.block_until_ready(w_folded_t)

    fwd = jax.jit(functools.partial(global_obj_disnet_forward, max_tile_b=64))
    out = fwd(data, w_folded_t, b_folded)
    out = jax.block_until_ready(out)

    ref = _reference_forward(data, w1, b1, w2, b2)
    assert out.shape == (B, N_OUT)
    # Folded-linear accumulation order vs the two-stage reference; sigmoid outputs in [0, 1].
    assert jnp.allclose(out, ref, atol=3e-4, rtol=3e-4), "mismatch vs JAX reference"

    print("KERNEL_OK")
</pallas_src>

<mosaic_0001>
module attributes {stable_mosaic.version = 11 : i64} {
  func.func @_global_obj_disnet_kernel(%arg0: i32, %arg1: memref<10x8x2048xf32, #tpu.memory_space<vmem>>, %arg2: memref<10x2048xf32, #tpu.memory_space<vmem>>, %arg3: memref<1x10xf32, #tpu.memory_space<vmem>>, %arg4: memref<8x10xf32, #tpu.memory_space<vmem>>) attributes {dimension_semantics = [#tpu.dimension_semantics<parallel>], iteration_bounds = array<i64: 1>, scalar_prefetch = 0 : i64, scratch_operands = 0 : i64, tpu.core_type = #tpu.core_type<tc>, window_params = [{transform_indices = @transform_0, window_bounds = array<i64: 10, 8, 2048>}, {pipeline_mode = #tpu.pipeline_mode<synchronous>, transform_indices = @transform_1, window_bounds = array<i64: 10, 2048>}, {pipeline_mode = #tpu.pipeline_mode<synchronous>, transform_indices = @transform_2, window_bounds = array<i64: 1, 10>}, {transform_indices = @transform_3, window_bounds = array<i64: 8, 10>}]} {
    %c0 = arith.constant 0 : index
    %c0_0 = arith.constant 0 : index
    %c0_1 = arith.constant 0 : index
    %0 = vector.load %arg1[%c0, %c0_0, %c0_1] : memref<10x8x2048xf32, #tpu.memory_space<vmem>>, vector<1x8x2048xf32>
    %1 = vector.shape_cast %0 : vector<1x8x2048xf32> to vector<8x2048xf32>
    %c1 = arith.constant 1 : index
    %c0_2 = arith.constant 0 : index
    %c0_3 = arith.constant 0 : index
    %2 = vector.load %arg1[%c1, %c0_2, %c0_3] : memref<10x8x2048xf32, #tpu.memory_space<vmem>>, vector<1x8x2048xf32>
    %3 = vector.shape_cast %2 : vector<1x8x2048xf32> to vector<8x2048xf32>
    %4 = arith.maximumf %1, %3 : vector<8x2048xf32>
    %c2 = arith.constant 2 : index
    %c0_4 = arith.constant 0 : index
    %c0_5 = arith.constant 0 : index
    %5 = vector.load %arg1[%c2, %c0_4, %c0_5] : memref<10x8x2048xf32, #tpu.memory_space<vmem>>, vector<1x8x2048xf32>
    %6 = vector.shape_cast %5 : vector<1x8x2048xf32> to vector<8x2048xf32>
    %7 = arith.maximumf %4, %6 : vector<8x2048xf32>
    %c3 = arith.constant 3 : index
    %c0_6 = arith.constant 0 : index
    %c0_7 = arith.constant 0 : index
    %8 = vector.load %arg1[%c3, %c0_6, %c0_7] : memref<10x8x2048xf32, #tpu.memory_space<vmem>>, vector<1x8x2048xf32>
    %9 = vector.shape_cast %8 : vector<1x8x2048xf32> to vector<8x2048xf32>
    %10 = arith.maximumf %7, %9 : vector<8x2048xf32>
    %c4 = arith.constant 4 : index
    %c0_8 = arith.constant 0 : index
    %c0_9 = arith.constant 0 : index
    %11 = vector.load %arg1[%c4, %c0_8, %c0_9] : memref<10x8x2048xf32, #tpu.memory_space<vmem>>, vector<1x8x2048xf32>
    %12 = vector.shape_cast %11 : vector<1x8x2048xf32> to vector<8x2048xf32>
    %13 = arith.maximumf %10, %12 : vector<8x2048xf32>
    %c5 = arith.constant 5 : index
    %c0_10 = arith.constant 0 : index
    %c0_11 = arith.constant 0 : index
    %14 = vector.load %arg1[%c5, %c0_10, %c0_11] : memref<10x8x2048xf32, #tpu.memory_space<vmem>>, vector<1x8x2048xf32>
    %15 = vector.shape_cast %14 : vector<1x8x2048xf32> to vector<8x2048xf32>
    %16 = arith.maximumf %13, %15 : vector<8x2048xf32>
    %c6 = arith.constant 6 : index
    %c0_12 = arith.constant 0 : index
    %c0_13 = arith.constant 0 : index
    %17 = vector.load %arg1[%c6, %c0_12, %c0_13] : memref<10x8x2048xf32, #tpu.memory_space<vmem>>, vector<1x8x2048xf32>
    %18 = vector.shape_cast %17 : vector<1x8x2048xf32> to vector<8x2048xf32>
    %19 = arith.maximumf %16, %18 : vector<8x2048xf32>
    %c7 = arith.constant 7 : index
    %c0_14 = arith.constant 0 : index
    %c0_15 = arith.constant 0 : index
    %20 = vector.load %arg1[%c7, %c0_14, %c0_15] : memref<10x8x2048xf32, #tpu.memory_space<vmem>>, vector<1x8x2048xf32>
    %21 = vector.shape_cast %20 : vector<1x8x2048xf32> to vector<8x2048xf32>
    %22 = arith.maximumf %19, %21 : vector<8x2048xf32>
    %c8 = arith.constant 8 : index
    %c0_16 = arith.constant 0 : index
    %c0_17 = arith.constant 0 : index
    %23 = vector.load %arg1[%c8, %c0_16, %c0_17] : memref<10x8x2048xf32, #tpu.memory_space<vmem>>, vector<1x8x2048xf32>
    %24 = vector.shape_cast %23 : vector<1x8x2048xf32> to vector<8x2048xf32>
    %25 = arith.maximumf %22, %24 : vector<8x2048xf32>
    %c9 = arith.constant 9 : index
    %c0_18 = arith.constant 0 : index
    %c0_19 = arith.constant 0 : index
    %26 = vector.load %arg1[%c9, %c0_18, %c0_19] : memref<10x8x2048xf32, #tpu.memory_space<vmem>>, vector<1x8x2048xf32>
    %27 = vector.shape_cast %26 : vector<1x8x2048xf32> to vector<8x2048xf32>
    %28 = arith.maximumf %25, %27 : vector<8x2048xf32>
    %cst = arith.constant 0.000000e+00 : f32
    %29 = vector.broadcast %cst : f32 to vector<8x2048xf32>
    %cst_20 = arith.constant 0.000000e+00 : f32
    %30 = vector.broadcast %cst_20 : f32 to vector<8x2048xf32>
    %c0_21 = arith.constant 0 : index
    %c0_22 = arith.constant 0 : index
    %c0_23 = arith.constant 0 : index
    %31 = vector.load %arg1[%c0_21, %c0_22, %c0_23] : memref<10x8x2048xf32, #tpu.memory_space<vmem>>, vector<1x8x2048xf32>
    %32 = vector.shape_cast %31 : vector<1x8x2048xf32> to vector<8x2048xf32>
    %33 = arith.subf %32, %28 : vector<8x2048xf32>
    %cst_24 = arith.constant 1.000000e+04 : f32
    %34 = vector.broadcast %cst_24 : f32 to vector<8x2048xf32>
    %35 = arith.mulf %33, %34 : vector<8x2048xf32>
    %36 = math.exp %35 : vector<8x2048xf32>
    %37 = arith.addf %29, %36 : vector<8x2048xf32>
    %c1_25 = arith.constant 1 : index
    %c0_26 = arith.constant 0 : index
    %c0_27 = arith.constant 0 : index
    %38 = vector.load %arg1[%c1_25, %c0_26, %c0_27] : memref<10x8x2048xf32, #tpu.memory_space<vmem>>, vector<1x8x2048xf32>
    %39 = vector.shape_cast %38 : vector<1x8x2048xf32> to vector<8x2048xf32>
    %40 = arith.subf %39, %28 : vector<8x2048xf32>
    %cst_28 = arith.constant 1.000000e+04 : f32
    %41 = vector.broadcast %cst_28 : f32 to vector<8x2048xf32>
    %42 = arith.mulf %40, %41 : vector<8x2048xf32>
    %43 = math.exp %42 : vector<8x2048xf32>
    %44 = arith.addf %37, %43 : vector<8x2048xf32>
    %cst_29 = arith.constant 1.000000e+00 : f32
    %45 = vector.broadcast %cst_29 : f32 to vector<8x2048xf32>
    %46 = arith.mulf %43, %45 : vector<8x2048xf32>
    %47 = arith.addf %30, %46 : vector<8x2048xf32>
    %c2_30 = arith.constant 2 : index
    %c0_31 = arith.constant 0 : index
    %c0_32 = arith.constant 0 : index
    %48 = vector.load %arg1[%c2_30, %c0_31, %c0_32] : memref<10x8x2048xf32, #tpu.memory_space<vmem>>, vector<1x8x2048xf32>
    %49 = vector.shape_cast %48 : vector<1x8x2048xf32> to vector<8x2048xf32>
    %50 = arith.subf %49, %28 : vector<8x2048xf32>
    %cst_33 = arith.constant 1.000000e+04 : f32
    %51 = vector.broadcast %cst_33 : f32 to vector<8x2048xf32>
    %52 = arith.mulf %50, %51 : vector<8x2048xf32>
    %53 = math.exp %52 : vector<8x2048xf32>
    %54 = arith.addf %44, %53 : vector<8x2048xf32>
    %cst_34 = arith.constant 2.000000e+00 : f32
    %55 = vector.broadcast %cst_34 : f32 to vector<8x2048xf32>
    %56 = arith.mulf %53, %55 : vector<8x2048xf32>
    %57 = arith.addf %47, %56 : vector<8x2048xf32>
    %c3_35 = arith.constant 3 : index
    %c0_36 = arith.constant 0 : index
    %c0_37 = arith.constant 0 : index
    %58 = vector.load %arg1[%c3_35, %c0_36, %c0_37] : memref<10x8x2048xf32, #tpu.memory_space<vmem>>, vector<1x8x2048xf32>
    %59 = vector.shape_cast %58 : vector<1x8x2048xf32> to vector<8x2048xf32>
    %60 = arith.subf %59, %28 : vector<8x2048xf32>
    %cst_38 = arith.constant 1.000000e+04 : f32
    %61 = vector.broadcast %cst_38 : f32 to vector<8x2048xf32>
    %62 = arith.mulf %60, %61 : vector<8x2048xf32>
    %63 = math.exp %62 : vector<8x2048xf32>
    %64 = arith.addf %54, %63 : vector<8x2048xf32>
    %cst_39 = arith.constant 3.000000e+00 : f32
    %65 = vector.broadcast %cst_39 : f32 to vector<8x2048xf32>
    %66 = arith.mulf %63, %65 : vector<8x2048xf32>
    %67 = arith.addf %57, %66 : vector<8x2048xf32>
    %c4_40 = arith.constant 4 : index
    %c0_41 = arith.constant 0 : index
    %c0_42 = arith.constant 0 : index
    %68 = vector.load %arg1[%c4_40, %c0_41, %c0_42] : memref<10x8x2048xf32, #tpu.memory_space<vmem>>, vector<1x8x2048xf32>
    %69 = vector.shape_cast %68 : vector<1x8x2048xf32> to vector<8x2048xf32>
    %70 = arith.subf %69, %28 : vector<8x2048xf32>
    %cst_43 = arith.constant 1.000000e+04 : f32
    %71 = vector.broadcast %cst_43 : f32 to vector<8x2048xf32>
    %72 = arith.mulf %70, %71 : vector<8x2048xf32>
    %73 = math.exp %72 : vector<8x2048xf32>
    %74 = arith.addf %64, %73 : vector<8x2048xf32>
    %cst_44 = arith.constant 4.000000e+00 : f32
    %75 = vector.broadcast %cst_44 : f32 to vector<8x2048xf32>
    %76 = arith.mulf %73, %75 : vector<8x2048xf32>
    %77 = arith.addf %67, %76 : vector<8x2048xf32>
    %c5_45 = arith.constant 5 : index
    %c0_46 = arith.constant 0 : index
    %c0_47 = arith.constant 0 : index
    %78 = vector.load %arg1[%c5_45, %c0_46, %c0_47] : memref<10x8x2048xf32, #tpu.memory_space<vmem>>, vector<1x8x2048xf32>
    %79 = vector.shape_cast %78 : vector<1x8x2048xf32> to vector<8x2048xf32>
    %80 = arith.subf %79, %28 : vector<8x2048xf32>
    %cst_48 = arith.constant 1.000000e+04 : f32
    %81 = vector.broadcast %cst_48 : f32 to vector<8x2048xf32>
    %82 = arith.mulf %80, %81 : vector<8x2048xf32>
    %83 = math.exp %82 : vector<8x2048xf32>
    %84 = arith.addf %74, %83 : vector<8x2048xf32>
    %cst_49 = arith.constant 5.000000e+00 : f32
    %85 = vector.broadcast %cst_49 : f32 to vector<8x2048xf32>
    %86 = arith.mulf %83, %85 : vector<8x2048xf32>
    %87 = arith.addf %77, %86 : vector<8x2048xf32>
    %c6_50 = arith.constant 6 : index
    %c0_51 = arith.constant 0 : index
    %c0_52 = arith.constant 0 : index
    %88 = vector.load %arg1[%c6_50, %c0_51, %c0_52] : memref<10x8x2048xf32, #tpu.memory_space<vmem>>, vector<1x8x2048xf32>
    %89 = vector.shape_cast %88 : vector<1x8x2048xf32> to vector<8x2048xf32>
    %90 = arith.subf %89, %28 : vector<8x2048xf32>
    %cst_53 = arith.constant 1.000000e+04 : f32
    %91 = vector.broadcast %cst_53 : f32 to vector<8x2048xf32>
    %92 = arith.mulf %90, %91 : vector<8x2048xf32>
    %93 = math.exp %92 : vector<8x2048xf32>
    %94 = arith.addf %84, %93 : vector<8x2048xf32>
    %cst_54 = arith.constant 6.000000e+00 : f32
    %95 = vector.broadcast %cst_54 : f32 to vector<8x2048xf32>
    %96 = arith.mulf %93, %95 : vector<8x2048xf32>
    %97 = arith.addf %87, %96 : vector<8x2048xf32>
    %c7_55 = arith.constant 7 : index
    %c0_56 = arith.constant 0 : index
    %c0_57 = arith.constant 0 : index
    %98 = vector.load %arg1[%c7_55, %c0_56, %c0_57] : memref<10x8x2048xf32, #tpu.memory_space<vmem>>, vector<1x8x2048xf32>
    %99 = vector.shape_cast %98 : vector<1x8x2048xf32> to vector<8x2048xf32>
    %100 = arith.subf %99, %28 : vector<8x2048xf32>
    %cst_58 = arith.constant 1.000000e+04 : f32
    %101 = vector.broadcast %cst_58 : f32 to vector<8x2048xf32>
    %102 = arith.mulf %100, %101 : vector<8x2048xf32>
    %103 = math.exp %102 : vector<8x2048xf32>
    %104 = arith.addf %94, %103 : vector<8x2048xf32>
    %cst_59 = arith.constant 7.000000e+00 : f32
    %105 = vector.broadcast %cst_59 : f32 to vector<8x2048xf32>
    %106 = arith.mulf %103, %105 : vector<8x2048xf32>
    %107 = arith.addf %97, %106 : vector<8x2048xf32>
    %c8_60 = arith.constant 8 : index
    %c0_61 = arith.constant 0 : index
    %c0_62 = arith.constant 0 : index
    %108 = vector.load %arg1[%c8_60, %c0_61, %c0_62] : memref<10x8x2048xf32, #tpu.memory_space<vmem>>, vector<1x8x2048xf32>
    %109 = vector.shape_cast %108 : vector<1x8x2048xf32> to vector<8x2048xf32>
    %110 = arith.subf %109, %28 : vector<8x2048xf32>
    %cst_63 = arith.constant 1.000000e+04 : f32
    %111 = vector.broadcast %cst_63 : f32 to vector<8x2048xf32>
    %112 = arith.mulf %110, %111 : vector<8x2048xf32>
    %113 = math.exp %112 : vector<8x2048xf32>
    %114 = arith.addf %104, %113 : vector<8x2048xf32>
    %cst_64 = arith.constant 8.000000e+00 : f32
    %115 = vector.broadcast %cst_64 : f32 to vector<8x2048xf32>
    %116 = arith.mulf %113, %115 : vector<8x2048xf32>
    %117 = arith.addf %107, %116 : vector<8x2048xf32>
    %c9_65 = arith.constant 9 : index
    %c0_66 = arith.constant 0 : index
    %c0_67 = arith.constant 0 : index
    %118 = vector.load %arg1[%c9_65, %c0_66, %c0_67] : memref<10x8x2048xf32, #tpu.memory_space<vmem>>, vector<1x8x2048xf32>
    %119 = vector.shape_cast %118 : vector<1x8x2048xf32> to vector<8x2048xf32>
    %120 = arith.subf %119, %28 : vector<8x2048xf32>
    %cst_68 = arith.constant 1.000000e+04 : f32
    %121 = vector.broadcast %cst_68 : f32 to vector<8x2048xf32>
    %122 = arith.mulf %120, %121 : vector<8x2048xf32>
    %123 = math.exp %122 : vector<8x2048xf32>
    %124 = arith.addf %114, %123 : vector<8x2048xf32>
    %cst_69 = arith.constant 9.000000e+00 : f32
    %125 = vector.broadcast %cst_69 : f32 to vector<8x2048xf32>
    %126 = arith.mulf %123, %125 : vector<8x2048xf32>
    %127 = arith.addf %117, %126 : vector<8x2048xf32>
    %128 = arith.divf %127, %124 : vector<8x2048xf32>
    %c0_70 = arith.constant 0 : index
    %c0_71 = arith.constant 0 : index
    %129 = vector.load %arg2[%c0_70, %c0_71] : memref<10x2048xf32, #tpu.memory_space<vmem>>, vector<10x2048xf32>
    %cst_72 = arith.constant dense<0.000000e+00> : vector<8x10xf32>
    %130 = tpu.matmul %128, %129, %cst_72 {dimension_numbers = #tpu.dot_dimension_numbers<[1], [1], [0], [0], [0, 0, 1, 0], [], []>} : vector<8x2048xf32>, vector<10x2048xf32>, vector<8x10xf32> -> vector<8x10xf32>
    %c0_73 = arith.constant 0 : index
    %c0_74 = arith.constant 0 : index
    %131 = vector.load %arg3[%c0_73, %c0_74] : memref<1x10xf32, #tpu.memory_space<vmem>>, vector<1x10xf32>
    %132 = vector.broadcast %131 : vector<1x10xf32> to vector<8x10xf32>
    %133 = arith.addf %130, %132 : vector<8x10xf32>
    %134 = arith.negf %133 : vector<8x10xf32>
    %135 = math.exp %134 : vector<8x10xf32>
    %cst_75 = arith.constant 1.000000e+00 : f32
    %136 = vector.broadcast %cst_75 : f32 to vector<8x10xf32>
    %137 = arith.addf %136, %135 : vector<8x10xf32>
    %138 = arith.divf %136, %137 : vector<8x10xf32>
    %c0_76 = arith.constant 0 : index
    %c0_77 = arith.constant 0 : index
    %139 = vector.load %arg4[%c0_76, %c0_77] : memref<8x10xf32, #tpu.memory_space<vmem>>, vector<8x10xf32>
    tpu.vector_store %arg4[%c0_76, %c0_77], %138 {strides = array<i32>} : memref<8x10xf32, #tpu.memory_space<vmem>>, vector<8x10xf32>,
    return
  }
  func.func @transform_0(%arg0: i32) -> (i32, i32, i32) {
    %c0_i32 = arith.constant 0 : i32
    %c0_i32_0 = arith.constant 0 : i32
    %c0_i32_1 = arith.constant 0 : i32
    return %c0_i32, %arg0, %c0_i32_0 : i32, i32, i32
  }
  func.func @transform_1(%arg0: i32) -> (i32, i32) {
    %c0_i32 = arith.constant 0 : i32
    %c0_i32_0 = arith.constant 0 : i32
    %c0_i32_1 = arith.constant 0 : i32
    return %c0_i32, %c0_i32_0 : i32, i32
  }
  func.func @transform_2(%arg0: i32) -> (i32, i32) {
    %c0_i32 = arith.constant 0 : i32
    %c0_i32_0 = arith.constant 0 : i32
    %c0_i32_1 = arith.constant 0 : i32
    return %c0_i32, %c0_i32_0 : i32, i32
  }
  func.func @transform_3(%arg0: i32) -> (i32, i32) {
    %c0_i32 = arith.constant 0 : i32
    %c0_i32_0 = arith.constant 0 : i32
    return %arg0, %c0_i32 : i32, i32
  }
}

</mosaic_0001>

<bundles_post_ra>
// kernel: global_obj_disnet_forward.2
= control target key start
LH: loop header
LB: loop body
LE: loop exit
PB: predicated region body
PF: predicated region fallthrough
CT: control target
= control target key end

     0   :  { %8 = vsyncpa [#allocation3], 0  ;;  %s5041_s0 = inlined_call_operand.hbm [shape: f32[10,2048], index: 0, kind: input, shape index: {}]   ;;  %s5042_s1 = inlined_call_operand.vmem [shape: f32[1,10], index: 1, kind: input, shape index: {}]   ;;  %s5043_s2 = inlined_call_operand.vmem [shape: f32[8,2048,10], index: 2, kind: input, shape index: {}]   ;;  %s5044_s3 = inlined_call_operand.hbm [shape: f32[8,10], index: 3, kind: output, shape index: {}]  }
   0x1   :  { %9 = vsyncpa [#allocation4], 0  ;;  %s3481_s12 = smov [#allocation2]   ;;  %s3433_s16 = scalar_lea.hbm %s5041_s0, 4096 }
   0x2   :  { %s17_s13 = sshll.u32 %s3481_s12, 4  ;;  %p3434_p0 = scmp.ne.s32.totalorder %s5041_s0, %s3433_s16  ;;  %s18_s13 = int_to_ptr.vmem [resolvable:$true] %s17_s13 }
   0x3   :  { %p3437_p1 = scmp.lt.u32.totalorder %s3433_s16, %s5041_s0 }
   0x5   :  { %p3439_p2 = pnand %p3437_p1, %p3434_p0 }
   0x7   :  { %3442 = shalt.err (!%p3439_p2)
}
   0x8   :  { %s3443_s21 = scalar_lea.vmem %s18_s13, 4096  ;;  %p3448_p4 = scmp.lt.s32.totalorder %s18_s13, %s18_s13 }
   0x9   :  { %p3444_p3 = scmp.ne.s32.totalorder %s18_s13, %s3443_s21  ;;  %p3449_p5 = scmp.lt.s32.totalorder %s3443_s21, %s3443_s21 }
   0xb   :  { %p3450_p6 = por %p3449_p5, %p3448_p4 }
   0xd   :  { %p3451_p7 = pnand %p3450_p6, %p3444_p3 }
   0xf   :  { %3454 = shalt.err (!%p3451_p7)
}
  0x10   :  { %s3482_s22 = smov 2048   ;;  %s3483_s23 = smov 128  }
  0x11   :  { %23 = dma.hbm_to_vmem [thread:$0]  %s5041_s0, 4096, %s18_s13, [#allocation3], %s3482_s22, %s3482_s22, %s3483_s23  }
  0x12   :  { %3477 = dma.done.wait [#allocation3], 4096  }
  0x13   :  { %3478 = vsyncadd [#allocation3], 4294963200  ;;  %v2245_v0 = vld [vmem:[#allocation2 + $0x8] sm:$0xff]  ;;  %v2244_v2 = vld [vmem:[#allocation2] sm:$0xff]  ;;  %s3484_s11 = smov [#allocation5]   ;;  %vm2849_vm0 = vcmask 80896  }
  0x14   :  { %v2261_v1 = vld [vmem:[#allocation2 + $0x88] sm:$0x3]  ;;  %v2260_v4 = vld [vmem:[#allocation2 + $0x80] sm:$0x3]  ;;  %v2247_v18 = vld [vmem:[#allocation2 + $0x18] sm:$0xff]  ;;  %s2857_s12 = sshll.u32 %s3484_s11, 4  ;;  %s2858_s12 = int_to_ptr.vmem [resolvable:$true] %s2857_s12 }
  0x15   :  { %v3027_v3 = vpack.c.bf16 %v2261_v1, %v2245_v0  ;;  %v2253_v5 = vld [vmem:[#allocation2 + $0x48] sm:$0xff]  ;;  %v3029_v7 = vpack.c.bf16 %v2260_v4, %v2244_v2  ;;  %v2252_v9 = vld [vmem:[#allocation2 + $0x40] sm:$0xff]  ;;  %v2263_v19 = vld [vmem:[#allocation2 + $0x98] sm:$0x3]  ;;  %s3455_s13 = scalar_lea.vmem %s2858_s12, 128  ;;  %p3460_p9 = scmp.lt.s32.totalorder %s2858_s12, %s2858_s12 }
  0x16   :  { %v2269_v6 = vld [vmem:[#allocation2 + $0xc8] sm:$0x3]  ;;  %v2268_v10 = vld [vmem:[#allocation2 + $0xc0] sm:$0x3]  ;;  %v3031_v22 = vpack.c.bf16 %v2263_v19, %v2247_v18  ;;  %v3669_v58 = vld [vmem:[#allocation2 + $0x10] sm:$0xff]  ;;  %p3456_p8 = scmp.ne.s32.totalorder %s2858_s12, %s3455_s13  ;;  %p3461_p10 = scmp.lt.s32.totalorder %s3455_s13, %s3455_s13 }
  0x17   :  { %v3043_v8 = vpack.c.bf16 %v2269_v6, %v2253_v5  ;;  %v3520_v11 = vld [vmem:[%s5043_s2 + $0x8] sm:$0xff]  ;;  %3028 = vmatprep.subr.bf16.mxu1 %v3027_v3  ;;  %v3045_v12 = vpack.c.bf16 %v2268_v10, %v2252_v9  ;;  %v3578_v31 = vld [vmem:[%s5043_s2] sm:$0xff]  ;;  %v3677_v61 = vld [vmem:[#allocation2 + $0x90] sm:$0x3] }
  0x18   :  { %v3525_v13 = vld [vmem:[%s5043_s2 + $0x88] sm:$0xff]  ;;  %3030 = vmatpush1.bf16.xpose.msra.mxu1 %v3029_v7  ;;  %v3583_v32 = vld [vmem:[%s5043_s2 + $0x80] sm:$0xff]  ;;  %v2255_v63 = vld [vmem:[#allocation2 + $0x58] sm:$0xff]  ;;  %p3462_p11 = por %p3461_p10, %p3460_p9 }
  0x19   :  { %v3530_v14 = vld [vmem:[%s5043_s2 + $0x108] sm:$0xff]  ;;  %3044 = vmatprep.subr.bf16.mxu0 %v3043_v8  ;;  %v861_v15 = vmax.f32 %v3520_v11, %v3525_v13  ;;  %3032 = vmatprep.subr.bf16.mxu1 %v3031_v22  ;;  %v3588_v33 = vld [vmem:[%s5043_s2 + $0x100] sm:$0xff]  ;;  %v860_v36 = vmax.f32 %v3578_v31, %v3583_v32  ;;  %v2271_v0 = vld [vmem:[#allocation2 + $0xd8] sm:$0x3] }
  0x1a   :  { %3046 = vmatpush1.bf16.xpose.msra.mxu0 %v3045_v12  ;;  %v3537_v16 = vld [vmem:[%s5043_s2 + $0x188] sm:$0xff]  ;;  %v3607_v39 = vld [vmem:[%s5043_s2 + $0x180] sm:$0xff]  ;;  %v3047_v5 = vpack.c.bf16 %v2271_v0, %v2255_v63  ;;  %v3695_v6 = vld [vmem:[%s5043_s2 + $0x18] sm:$0xff]  ;;  %p3463_p12 = pnand %p3462_p11, %p3456_p8 }
  0x1b   :  { %v894_v17 = vmax.f32 %v861_v15, %v3530_v14  ;;  %v3543_v20 = vld [vmem:[%s5043_s2 + $0x48] sm:$0xff]  ;;  %v3620_v42 = vld [vmem:[%s5043_s2 + $0x200] sm:$0xff]  ;;  %v893_v43 = vmax.f32 %v860_v36, %v3588_v33  ;;  %v3702_v9 = vld [vmem:[%s5043_s2 + $0x98] sm:$0xff] }
  0x1c   :  { %v3548_v21 = vld [vmem:[%s5043_s2 + $0x208] sm:$0xff]  ;;  %v3628_v46 = vld [vmem:[%s5043_s2 + $0x40] sm:$0xff]  ;;  %3048 = vmatprep.subr.bf16.mxu0 %v3047_v5  ;;  %v863_v19 = vmax.f32 %v3695_v6, %v3702_v9  ;;  %v3745_v5 = vld [vmem:[%s5043_s2 + $0x118] sm:$0xff] }
  0x1d   :  { %v3553_v23 = vld [vmem:[%s5043_s2 + $0xc8] sm:$0xff]  ;;  %v927_v25 = vmax.f32 %v894_v17, %v3537_v16  ;;  %v3633_v47 = vld [vmem:[%s5043_s2 + $0xc0] sm:$0xff]  ;;  %v926_v52 = vmax.f32 %v893_v43, %v3607_v39  ;;  %v3719_v43 = vld [vmem:[#allocation2 + $0x50] sm:$0xff] }
  0x1e   :  { %v3558_v24 = vld [vmem:[%s5043_s2 + $0x148] sm:$0xff]  ;;  %v869_v26 = vmax.f32 %v3543_v20, %v3553_v23  ;;  %v3638_v48 = vld [vmem:[%s5043_s2 + $0x140] sm:$0xff]  ;;  %v868_v53 = vmax.f32 %v3628_v46, %v3633_v47 }
  0x1f   :  { %v3566_v27 = vld [vmem:[%s5043_s2 + $0x288] sm:$0xff]  ;;  %v960_v29 = vmax.f32 %v927_v25, %v3548_v21  ;;  %v3667_v57 = vld [vmem:[%s5043_s2 + $0x280] sm:$0xff]  ;;  %v959_v60 = vmax.f32 %v926_v52, %v3620_v42 }
  0x20   :  { %v3571_v28 = vld [vmem:[%s5043_s2 + $0x1c8] sm:$0xff]  ;;  %v902_v30 = vmax.f32 %v869_v26, %v3558_v24  ;;  %v3674_v59 = vld [vmem:[%s5043_s2 + $0x1c0] sm:$0xff]  ;;  %v901_v62 = vmax.f32 %v868_v53, %v3638_v48 }
  0x21   :  { %v3593_v34 = vld [vmem:[%s5043_s2 + $0x308] sm:$0xff]  ;;  %v993_v37 = vmax.f32 %v960_v29, %v3566_v27  ;;  %v3685_v3 = vld [vmem:[%s5043_s2 + $0x300] sm:$0xff]  ;;  %v992_v7 = vmax.f32 %v959_v60, %v3667_v57 }
  0x22   :  { %v3598_v35 = vld [vmem:[%s5043_s2 + $0x248] sm:$0xff]  ;;  %v935_v38 = vmax.f32 %v902_v30, %v3571_v28  ;;  %v3690_v4 = vld [vmem:[%s5043_s2 + $0x240] sm:$0xff]  ;;  %v934_v8 = vmax.f32 %v901_v62, %v3674_v59 }
  0x23   :  { %v2978_v40 = vld [vmem:[%s5043_s2 + $0x388] sm:$0xff]  ;;  %v1026_v44 = vmax.f32 %v993_v37, %v3593_v34  ;;  %v1025_v17 = vmax.f32 %v992_v7, %v3685_v3 }
  0x24   :  { %v3615_v41 = vld [vmem:[%s5043_s2 + $0x2c8] sm:$0xff]  ;;  %v968_v45 = vmax.f32 %v935_v38, %v3598_v35  ;;  %v967_v18 = vmax.f32 %v934_v8, %v3690_v4 }
  0x25   :  { %v3643_v49 = vld [vmem:[%s5043_s2 + $0x408] sm:$0xff]  ;;  %v1059_v54 = vmax.f32 %v1026_v44, %v2978_v40 }
  0x26   :  { %v3648_v50 = vld [vmem:[%s5043_s2 + $0x488] sm:$0xff]  ;;  %v1001_v56 = vmax.f32 %v968_v45, %v3615_v41 }
  0x27   :  { %v3653_v51 = vld [vmem:[%s5043_s2 + $0x348] sm:$0xff]  ;;  %v1092_v1 = vmax.f32 %v1059_v54, %v3643_v49 }
  0x28   :  { %v3661_v55 = vld [vmem:[%s5043_s2 + $0x3c8] sm:$0xff]  ;;  %v1034_v2 = vmax.f32 %v1001_v56, %v3653_v51 }
  0x29   :  { %v1125_v10 = vmax.f32 %v1092_v1, %v3648_v50  ;;  %v3738_v1 = vld [vmem:[%s5043_s2 + $0x2c0] sm:$0xff] }
  0x2a   :  { %v1067_v15 = vmax.f32 %v1034_v2, %v3661_v55 }
  0x2b   :  { %v1141_v22 = vsub.f32 %v3520_v11, %v1125_v10  ;;  %v1221_v25 = vsub.f32 %v3525_v13, %v1125_v10  ;;  %v1317_v26 = vsub.f32 %v3530_v14, %v1125_v10  ;;  %v1429_v29 = vsub.f32 %v3537_v16, %v1125_v10  ;;  %v3721_v11 = vld [vmem:[#allocation2 + $0xd0] sm:$0x3]  ;;  %v3726_v16 = vld [vmem:[%s5043_s2 + $0x448] sm:$0xff] }
  0x2c   :  { %v1541_v30 = vsub.f32 %v3548_v21, %v1125_v10  ;;  %v1653_v36 = vsub.f32 %v3566_v27, %v1125_v10  ;;  %v1765_v37 = vsub.f32 %v3593_v34, %v1125_v10  ;;  %v1877_v38 = vsub.f32 %v2978_v40, %v1125_v10  ;;  %v3731_v21 = vld [vmem:[%s5043_s2 + $0x380] sm:$0xff] }
  0x2d   :  { %v1157_v44 = vmul.f32 10000.0, %v1141_v22  ;;  %v1237_v45 = vmul.f32 10000.0, %v1221_v25  ;;  %v1333_v52 = vmul.f32 10000.0, %v1317_v26  ;;  %v1445_v53 = vmul.f32 10000.0, %v1429_v29  ;;  %v3756_v25 = vld [vmem:[%s5043_s2 + $0x400] sm:$0xff] }
  0x2e   :  { %v1557_v13 = vmul.f32 10000.0, %v1541_v30  ;;  %v1669_v54 = vmul.f32 10000.0, %v1653_v36  ;;  %v1781_v14 = vmul.f32 10000.0, %v1765_v37  ;;  %v1893_v56 = vmul.f32 10000.0, %v1877_v38  ;;  %v3762_v29 = vld [vmem:[%s5043_s2 + $0x340] sm:$0xff]  ;;  %v3767_v30 = vld [vmem:[%s5043_s2 + $0x198] sm:$0xff] }
  0x2f   :  { %v1174_v27 = vmul.f32 1.442695, %v1157_v44  ;;  %v1254_v34 = vmul.f32 1.442695, %v1237_v45  ;;  %v1350_v40 = vmul.f32 1.442695, %v1333_v52  ;;  %v1989_v60 = vsub.f32 %v3643_v49, %v1125_v10 }
  0x30   :  { %v1462_v62 = vmul.f32 1.442695, %v1445_v53  ;;  %v1574_v63 = vmul.f32 1.442695, %v1557_v13  ;;  %v2101_v0 = vsub.f32 %v3648_v50, %v1125_v10  ;;  %v1686_v7 = vmul.f32 1.442695, %v1669_v54 }
  0x31   :  { %3077 = vpow2.f32 %v1174_v27  ;;  %v1798_v49 = vmul.f32 1.442695, %v1781_v14  ;;  %v2005_v8 = vmul.f32 10000.0, %v1989_v60  ;;  %v3750_v50 = vld [vmem:[%s5043_s2 + $0x4c8] sm:$0xff]  ;;  %v1100_v22 = vmax.f32 %v1067_v15, %v3726_v16 }
  0x32   :  { %3079 = vpow2.f32 %v1254_v34  ;;  %v2117_v10 = vmul.f32 10000.0, %v2101_v0  ;;  %v1058_v26 = vmax.f32 %v1025_v17, %v3731_v21  ;;  %v1910_v36 = vmul.f32 1.442695, %v1893_v56 }
  0x33   :  { %3081 = vpow2.f32 %v1350_v40  ;;  %v1000_v15 = vmax.f32 %v967_v18, %v3738_v1  ;;  %v3771_v37 = vmax.f32 %v863_v19, %v3745_v5  ;;  %v2022_v38 = vmul.f32 1.442695, %v2005_v8 }
  0x34   :  { %3083 = vpow2.f32 %v1462_v62  ;;  %v2134_v17 = vmul.f32 1.442695, %v2117_v10  ;;  %v3774_v44 = vmax.f32 %v1100_v22, %v3750_v50  ;;  %v1091_v45 = vmax.f32 %v1058_v26, %v3756_v25 }
  0x35   :  { %3085 = vpow2.f32 %v1574_v63  ;;  %v3778_v52 = vmax.f32 %v1000_v15, %v3762_v29  ;;  %v929_v53 = vmax.f32 %v3771_v37, %v3767_v30 }
  0x36   :  { %3087 = vpow2.f32 %v1686_v7  ;;  %v1149_v18 = vsub.f32 %v3543_v20, %v3774_v44  ;;  %v1229_v19 = vsub.f32 %v3553_v23, %v3774_v44  ;;  %v1325_v13 = vsub.f32 %v3558_v24, %v3774_v44  ;;  %v3797_v24 = vld [vmem:[%s5043_s2 + $0x480] sm:$0xff] }
  0x37   :  { %3089 = vpow2.f32 %v1798_v49  ;;  %v1437_v54 = vsub.f32 %v3571_v28, %v3774_v44  ;;  %v1549_v14 = vsub.f32 %v3598_v35, %v3774_v44  ;;  %v1661_v56 = vsub.f32 %v3615_v41, %v3774_v44 }
  0x38   :  { %3091 = vpow2.f32 %v1910_v36  ;;  %v1165_v27 = vmul.f32 10000.0, %v1149_v18  ;;  %v1245_v34 = vmul.f32 10000.0, %v1229_v19  ;;  %v1341_v20 = vmul.f32 10000.0, %v1325_v13 }
  0x39   :  { %3093 = vpow2.f32 %v2022_v38  ;;  %v1453_v40 = vmul.f32 10000.0, %v1437_v54  ;;  %v1565_v23 = vmul.f32 10000.0, %v1549_v14  ;;  %v1677_v60 = vmul.f32 10000.0, %v1661_v56 }
  0x3a   :  { %3095 = vpow2.f32 %v2134_v17  ;;  %v1190_v28 = vmul.f32 1.442695, %v1165_v27  ;;  %v1270_v62 = vmul.f32 1.442695, %v1245_v34  ;;  %v1366_v35 = vmul.f32 1.442695, %v1341_v20 }
  0x3b   :  { %v3078_v63 = vpop.eup %3077  ;;  %v1478_v0 = vmul.f32 1.442695, %v1453_v40  ;;  %v1590_v41 = vmul.f32 1.442695, %v1565_v23  ;;  %v1702_v7 = vmul.f32 1.442695, %v1677_v60  ;;  %v1773_v49 = vsub.f32 %v3653_v51, %v3774_v44 }
  0x3c   :  { %v3080_v8 = vpop.eup %3079  ;;  %3097 = vpow2.f32 %v1190_v28  ;;  %v1885_v10 = vsub.f32 %v3661_v55, %v3774_v44  ;;  %v1997_v22 = vsub.f32 %v3726_v16, %v3774_v44  ;;  %v2109_v26 = vsub.f32 %v3750_v50, %v3774_v44 }
  0x3d   :  { %v3082_v36 = vpop.eup %3081  ;;  %v1285_v15 = vadd.f32 %v3080_v8, %v3078_v63  ;;  %3099 = vpow2.f32 %v1270_v62  ;;  %v1789_v38 = vmul.f32 10000.0, %v1773_v49  ;;  %v3808_v17 = vmax.f32 %v1091_v45, %v3797_v24 }
  0x3e   :  { %v3084_v18 = vpop.eup %3083  ;;  %v1397_v51 = vmul.f32 2.0, %v3082_v36  ;;  %3101 = vpow2.f32 %v1366_v35  ;;  %v1901_v19 = vmul.f32 10000.0, %v1885_v10  ;;  %v2013_v13 = vmul.f32 10000.0, %v1997_v22 }
  0x3f   :  { %v3086_v54 = vpop.eup %3085  ;;  %v1381_v55 = vadd.f32 %v3082_v36, %v1285_v15  ;;  %v1509_v14 = vmul.f32 3.0, %v3084_v18  ;;  %3103 = vpow2.f32 %v1478_v0  ;;  %v1814_v16 = vmul.f32 1.442695, %v1789_v38 }
  0x40   :  { %v3088_v56 = vpop.eup %3087  ;;  %v1413_v27 = vadd.f32 %v3080_v8, %v1397_v51  ;;  %v1621_v50 = vmul.f32 4.0, %v3086_v54  ;;  %3105 = vpow2.f32 %v1590_v41  ;;  %v1926_v44 = vmul.f32 1.442695, %v1901_v19 }
  0x41   :  { %v3090_v34 = vpop.eup %3089  ;;  %v1493_v20 = vadd.f32 %v3084_v18, %v1381_v55  ;;  %v1733_v40 = vmul.f32 5.0, %v3088_v56  ;;  %3107 = vpow2.f32 %v1702_v7  ;;  %v2038_v45 = vmul.f32 1.442695, %v2013_v13 }
  0x42   :  { %v3092_v23 = vpop.eup %3091  ;;  %v1525_v60 = vadd.f32 %v1509_v14, %v1413_v27  ;;  %v1845_v28 = vmul.f32 6.0, %v3090_v34  ;;  %3109 = vpow2.f32 %v1814_v16  ;;  %v2125_v62 = vmul.f32 10000.0, %v2109_v26 }
  0x43   :  { %v3094_v35 = vpop.eup %3093  ;;  %v1605_v63 = vadd.f32 %v3086_v54, %v1493_v20  ;;  %v1957_v49 = vmul.f32 7.0, %v3092_v23  ;;  %3111 = vpow2.f32 %v1926_v44  ;;  %v1140_v0 = vsub.f32 %v3578_v31, %v3808_v17 }
  0x44   :  { %v3096_v8 = vpop.eup %3095  ;;  %v1637_v41 = vadd.f32 %v1621_v50, %v1525_v60  ;;  %v2069_v10 = vmul.f32 8.0, %v3094_v35  ;;  %3113 = vpow2.f32 %v2038_v45  ;;  %v2150_v22 = vmul.f32 1.442695, %v2125_v62 }
  0x45   :  { %v1717_v36 = vadd.f32 %v3088_v56, %v1605_v63  ;;  %v2181_v7 = vmul.f32 9.0, %v3096_v8  ;;  %v1156_v15 = vmul.f32 10000.0, %v1140_v0  ;;  %v1220_v38 = vsub.f32 %v3583_v32, %v3808_v17 }
  0x46   :  { %v3098_v18 = vpop.eup %3097  ;;  %v1749_v26 = vadd.f32 %v1733_v40, %v1637_v41  ;;  %3115 = vpow2.f32 %v2150_v22  ;;  %v1316_v51 = vsub.f32 %v3588_v33, %v3808_v17  ;;  %v1428_v31 = vsub.f32 %v3607_v39, %v3808_v17 }
  0x47   :  { %v3100_v19 = vpop.eup %3099  ;;  %v1829_v13 = vadd.f32 %v3090_v34, %v1717_v36  ;;  %v1172_v54 = vmul.f32 1.442695, %v1156_v15  ;;  %v1236_v55 = vmul.f32 10000.0, %v1220_v38  ;;  %v1540_v14 = vsub.f32 %v3620_v42, %v3808_v17 }
  0x48   :  { %v3102_v16 = vpop.eup %3101  ;;  %v1861_v56 = vadd.f32 %v1845_v28, %v1749_v26  ;;  %v1293_v27 = vadd.f32 %v3100_v19, %v3098_v18  ;;  %v1332_v32 = vmul.f32 10000.0, %v1316_v51  ;;  %v1444_v50 = vmul.f32 10000.0, %v1428_v31 }
  0x49   :  { %v3104_v44 = vpop.eup %3103  ;;  %v1941_v20 = vadd.f32 %v3092_v23, %v1829_v13  ;;  %v1405_v40 = vmul.f32 2.0, %v3102_v16  ;;  %3117 = vpow2.f32 %v1172_v54  ;;  %v1252_v33 = vmul.f32 1.442695, %v1236_v55 }
  0x4a   :  { %v3106_v45 = vpop.eup %3105  ;;  %v1973_v60 = vadd.f32 %v1957_v49, %v1861_v56  ;;  %v1389_v39 = vadd.f32 %v3102_v16, %v1293_v27  ;;  %v1517_v62 = vmul.f32 3.0, %v3104_v44  ;;  %v1348_v34 = vmul.f32 1.442695, %v1332_v32 }
  0x4b   :  { %v3108_v63 = vpop.eup %3107  ;;  %v2053_v0 = vadd.f32 %v3094_v35, %v1941_v20  ;;  %v1421_v41 = vadd.f32 %v3100_v19, %v1405_v40  ;;  %v1629_v22 = vmul.f32 4.0, %v3106_v45  ;;  %3119 = vpow2.f32 %v1252_v33 }
  0x4c   :  { %v3110_v42 = vpop.eup %3109  ;;  %v2085_v28 = vadd.f32 %v2069_v10, %v1973_v60  ;;  %v1501_v36 = vadd.f32 %v3104_v44, %v1389_v39  ;;  %v1741_v15 = vmul.f32 5.0, %v3108_v63  ;;  %3121 = vpow2.f32 %v1348_v34 }
  0x4d   :  { %v3112_v38 = vpop.eup %3111  ;;  %v2165_v23 = vadd.f32 %v3096_v8, %v2053_v0  ;;  %v1533_v18 = vadd.f32 %v1517_v62, %v1421_v41  ;;  %v1853_v26 = vmul.f32 6.0, %v3110_v42  ;;  %v1460_v51 = vmul.f32 1.442695, %v1444_v50 }
  0x4e   :  { %v3114_v31 = vpop.eup %3113  ;;  %v3820_v49 = vadd.f32 %v2181_v7, %v2085_v28  ;;  %v1613_v13 = vadd.f32 %v3106_v45, %v1501_v36  ;;  %v1965_v54 = vmul.f32 7.0, %v3112_v38  ;;  %v1556_v55 = vmul.f32 10000.0, %v1540_v14  ;;  %v3831_v14 = vld [vmem:[%s5043_s2 + $0x3c0] sm:$0xff] }
  0x4f   :  { %3123 = vrcp.f32 %v2165_v23  ;;  %v1645_v35 = vadd.f32 %v1629_v22, %v1533_v18  ;;  %v2077_v19 = vmul.f32 8.0, %v3114_v31  ;;  %v1652_v10 = vsub.f32 %v3667_v57, %v3808_v17  ;;  %v3852_v18 = vld [vmem:[%s5043_s2 + $0x4c0] sm:$0xff] }
  0x50   :  { %v3116_v16 = vpop.eup %3115  ;;  %v1725_v56 = vadd.f32 %v3108_v63, %v1613_v13  ;;  %3125 = vpow2.f32 %v1460_v51  ;;  %v1572_v27 = vmul.f32 1.442695, %v1556_v55  ;;  %v1764_v8 = vsub.f32 %v3685_v3, %v3808_v17  ;;  %v3862_v51 = vld [vmem:[%s5043_s2 + $0xd8] sm:$0xff] }
  0x51   :  { %v1757_v32 = vadd.f32 %v1741_v15, %v1645_v35  ;;  %v2189_v50 = vmul.f32 9.0, %v3116_v16  ;;  %v1668_v7 = vmul.f32 10000.0, %v1652_v10  ;;  %v1876_v44 = vsub.f32 %v3731_v21, %v3808_v17  ;;  %v3868_v55 = vld [vmem:[%s5043_s2 + $0x298] sm:$0xff]  ;;  %v3873_v35 = vld [vmem:[%s5043_s2 + $0x10] sm:$0xff] }
  0x52   :  { %v1837_v20 = vadd.f32 %v3110_v42, %v1725_v56  ;;  %3127 = vpow2.f32 %v1572_v27  ;;  %v1780_v57 = vmul.f32 10000.0, %v1764_v8  ;;  %v1988_v40 = vsub.f32 %v3756_v25, %v3808_v17  ;;  %v3842_v25 = vld [vmem:[%s5043_s2 + $0x440] sm:$0xff] }
  0x53   :  { %v3118_v33 = vpop.eup %3117  ;;  %v1869_v45 = vadd.f32 %v1853_v26, %v1757_v32  ;;  %v1684_v3 = vmul.f32 1.442695, %v1668_v7  ;;  %v1892_v60 = vmul.f32 10000.0, %v1876_v44  ;;  %v2100_v39 = vsub.f32 %v3797_v24, %v3808_v17  ;;  %v3847_v17 = vld [vmem:[%s5043_s2 + $0x218] sm:$0xff] }
  0x54   :  { %v1949_v62 = vadd.f32 %v3112_v38, %v1837_v20  ;;  %v1796_v21 = vmul.f32 1.442695, %v1780_v57  ;;  %v2004_v34 = vmul.f32 10000.0, %v1988_v40  ;;  %v1066_v63 = vmax.f32 %v3778_v52, %v3831_v14  ;;  %v3857_v26 = vld [vmem:[%s5043_s2 + $0x58] sm:$0xff] }
  0x55   :  { %v3120_v0 = vpop.eup %3119  ;;  %v1981_v41 = vadd.f32 %v1965_v54, %v1869_v45  ;;  %3129 = vpow2.f32 %v1684_v3  ;;  %v1908_v22 = vmul.f32 1.442695, %v1892_v60  ;;  %v2116_v42 = vmul.f32 10000.0, %v2100_v39 }
  0x56   :  { %v3122_v28 = vpop.eup %3121  ;;  %v2061_v36 = vadd.f32 %v3114_v31, %v1949_v62  ;;  %v1284_v15 = vadd.f32 %v3120_v0, %v3118_v33  ;;  %3131 = vpow2.f32 %v1796_v21  ;;  %v2020_v24 = vmul.f32 1.442695, %v2004_v34 }
  0x57   :  { %v2093_v52 = vadd.f32 %v2077_v19, %v1981_v41  ;;  %v1396_v38 = vmul.f32 2.0, %v3122_v28  ;;  %3133 = vpow2.f32 %v1908_v22  ;;  %v2132_v23 = vmul.f32 1.442695, %v2116_v42  ;;  %v3878_v19 = vld [vmem:[%s5043_s2 + $0x90] sm:$0xff] }
  0x58   :  { %v2173_v31 = vadd.f32 %v3116_v16, %v2061_v36  ;;  %v1380_v13 = vadd.f32 %v3122_v28, %v1284_v15  ;;  %3135 = vpow2.f32 %v2020_v24  ;;  %v1099_v54 = vmax.f32 %v1066_v63, %v3842_v25 }
  0x59   :  { %v3124_v10 = vpop.eup %3123  ;;  %v2205_v16 = vadd.f32 %v2189_v50, %v2093_v52  ;;  %v1412_v56 = vadd.f32 %v3120_v0, %v1396_v38  ;;  %3137 = vpow2.f32 %v2132_v23  ;;  %v3884_v27 = vmax.f32 %v929_v53, %v3847_v17 }
  0x5a   :  { %v3126_v8 = vpop.eup %3125  ;;  %v2215_v32 = vmul.f32 %v3124_v10, %v3820_v49  ;;  %3139 = vrcp.f32 %v2173_v31  ;;  %v3888_v7 = vmax.f32 %v1099_v54, %v3852_v18  ;;  %v871_v44 = vmax.f32 %v3857_v26, %v3862_v51 }
  0x5b   :  { %v1492_v20 = vadd.f32 %v3126_v8, %v1380_v13  ;;  %v1508_v50 = vmul.f32 3.0, %v3126_v8  ;;  %v995_v57 = vmax.f32 %v3884_v27, %v3868_v55  ;;  %v862_v37 = vmax.f32 %v3873_v35, %v3878_v19  ;;  %v3962_v27 = vld [vmem:[%s5043_s2 + $0x258] sm:$0xff] }
  0x5c   :  { %v3128_v53 = vpop.eup %3127  ;;  %2347 = vmatprep.mubr.f32.mxu1 %v2215_v32  ;;  %v1148_v49 = vsub.f32 %v3628_v46, %v3888_v7  ;;  %v1228_v40 = vsub.f32 %v3633_v47, %v3888_v7  ;;  %v1324_v33 = vsub.f32 %v3638_v48, %v3888_v7  ;;  %v1436_v45 = vsub.f32 %v3674_v59, %v3888_v7 }
  0x5d   :  { %v1524_v3 = vadd.f32 %v1508_v50, %v1412_v56  ;;  %v1604_v60 = vadd.f32 %v3128_v53, %v1492_v20  ;;  %v1620_v39 = vmul.f32 4.0, %v3128_v53  ;;  %v1548_v62 = vsub.f32 %v3690_v4, %v3888_v7 }
  0x5e   :  { %v1164_v21 = vmul.f32 10000.0, %v1148_v49  ;;  %v1244_v34 = vmul.f32 10000.0, %v1228_v40  ;;  %v1340_v63 = vmul.f32 10000.0, %v1324_v33  ;;  %v1452_v0 = vmul.f32 10000.0, %v1436_v45  ;;  %v3915_v45 = vld [vmem:[%s5043_s2 + $0x318] sm:$0xff] }
  0x5f   :  { %v3130_v46 = vpop.eup %3129  ;;  %v1636_v41 = vadd.f32 %v1620_v39, %v1524_v3  ;;  %v1564_v22 = vmul.f32 10000.0, %v1548_v62  ;;  %v1660_v47 = vsub.f32 %v3738_v1, %v3888_v7  ;;  %v1772_v48 = vsub.f32 %v3762_v29, %v3888_v7 }
  0x60   :  { %v3132_v59 = vpop.eup %3131  ;;  %v1716_v42 = vadd.f32 %v3130_v46, %v1604_v60  ;;  %v1732_v28 = vmul.f32 5.0, %v3130_v46  ;;  %v1188_v36 = vmul.f32 1.442695, %v1164_v21  ;;  %v1268_v15 = vmul.f32 1.442695, %v1244_v34 }
  0x61   :  { %v3134_v24 = vpop.eup %3133  ;;  %v1844_v4 = vmul.f32 6.0, %v3132_v59  ;;  %v1364_v52 = vmul.f32 1.442695, %v1340_v63  ;;  %v1476_v38 = vmul.f32 1.442695, %v1452_v0  ;;  %v1676_v23 = vmul.f32 10000.0, %v1660_v47 }
  0x62   :  { %v3136_v31 = vpop.eup %3135  ;;  %v1748_v13 = vadd.f32 %v1732_v28, %v1636_v41  ;;  %v1828_v54 = vadd.f32 %v3132_v59, %v1716_v42  ;;  %v1956_v10 = vmul.f32 7.0, %v3134_v24  ;;  %3141 = vpow2.f32 %v1188_v36  ;;  %v3931_v63 = vld [vmem:[#allocation2 + $0x28] sm:$0xff]  ;;  %v3957_v42 = vld [vmem:[%s5043_s2 + $0x498] sm:$0xff]  ;;  %v3971_v28 = vld [vmem:[%s5043_s2 + $0x50] sm:$0xff] }
  0x63   :  { %v3138_v56 = vpop.eup %3137  ;;  %v2068_v1 = vmul.f32 8.0, %v3136_v31  ;;  %3143 = vpow2.f32 %v1268_v15  ;;  %v1588_v8 = vmul.f32 1.442695, %v1564_v22  ;;  %v1700_v29 = vmul.f32 1.442695, %v1676_v23  ;;  %v3938_v22 = vld [vmem:[%s5043_s2 + $0x418] sm:$0xff] }
  0x64   :  { %v3140_v32 = vpop.eup %3139  ;;  %v1860_v20 = vadd.f32 %v1844_v4, %v1748_v13  ;;  %v1940_v50 = vadd.f32 %v3134_v24, %v1828_v54  ;;  %v2180_v53 = vmul.f32 9.0, %v3138_v56  ;;  %3145 = vpow2.f32 %v1364_v52  ;;  %v3976_v36 = vld [vmem:[%s5043_s2 + $0xd0] sm:$0xff]  ;;  %v3993_v23 = vld [vmem:[#allocation2 + $0xa0] sm:$0x3] }
  0x65   :  { %v2231_v49 = vmul.f32 %v3140_v32, %v2205_v16  ;;  %3147 = vpow2.f32 %v1476_v38  ;;  %v1788_v40 = vmul.f32 10000.0, %v1772_v48  ;;  %v1884_v33 = vsub.f32 %v3831_v14, %v3888_v7  ;;  %v3922_v16 = vld [vmem:[%s5043_s2 + $0x398] sm:$0xff]  ;;  %v3989_v52 = vld [vmem:[%s5043_s2 + $0x190] sm:$0xff]  ;;  %v3991_v38 = vld [vmem:[#allocation2 + $0x20] sm:$0xff]  ;;  %5048 = vst [vmem:[#allocation10_spill] sm:$0xff] %v3993_v23 }
  0x66   :  { %v1972_v3 = vadd.f32 %v1956_v10, %v1860_v20  ;;  %v2052_v60 = vadd.f32 %v3136_v31, %v1940_v50  ;;  %3149 = vpow2.f32 %v1588_v8  ;;  %v1996_v39 = vsub.f32 %v3842_v25, %v3888_v7  ;;  %v3927_v14 = vld [vmem:[%s5043_s2 + $0x158] sm:$0xff]  ;;  %v3933_v25 = vld [vmem:[#allocation2 + $0xa8] sm:$0x3]  ;;  %5047 = vst [vmem:[#allocation9_spill] sm:$0xff] %v3991_v38  ;;  %v4003_v10 = vld [vmem:[%s5043_s2 + $0x150] sm:$0xff] }
  0x67   :  { %2627 = vmatprep.mubr.f32.mxu0 %v2231_v49  ;;  %3151 = vpow2.f32 %v1700_v29  ;;  %v1812_v62 = vmul.f32 1.442695, %v1788_v40  ;;  %v1900_v21 = vmul.f32 10000.0, %v1884_v33  ;;  %v2108_v34 = vsub.f32 %v3852_v18, %v3888_v7  ;;  %v3947_v18 = vld [vmem:[%s5043_s2 + $0x1d8] sm:$0xff]  ;;  %v3952_v7 = vld [vmem:[%s5043_s2 + $0x110] sm:$0xff]  ;;  %v4020_v50 = vld [vmem:[%s5043_s2 + $0x28] sm:$0xff] }
  0x68   :  { %v2084_v0 = vadd.f32 %v2068_v1, %v1972_v3  ;;  %v2164_v46 = vadd.f32 %v3138_v56, %v2052_v60  ;;  %v2012_v41 = vmul.f32 10000.0, %v1996_v39  ;;  %v1028_v47 = vmax.f32 %v995_v57, %v3915_v45  ;;  %v4005_v56 = vld [vmem:[#allocation2 + $0x68] sm:$0xff]  ;;  %v4013_v20 = vld [vmem:[%s5043_s2 + $0x210] sm:$0xff] }
  0x69   :  { %3153 = vpow2.f32 %v1812_v62  ;;  %v1924_v48 = vmul.f32 1.442695, %v1900_v21  ;;  %v2124_v59 = vmul.f32 10000.0, %v2108_v34  ;;  %v904_v57 = vmax.f32 %v871_v44, %v3927_v14  ;;  %v3984_v44 = vld [vmem:[%s5043_s2 + $0x2d8] sm:$0xff]  ;;  %v4007_v1 = vld [vmem:[#allocation2 + $0xe8] sm:$0x3] }
  0x6a   :  { %3155 = vrcp.f32 %v2164_v46  ;;  %v2036_v15 = vmul.f32 1.442695, %v2012_v41  ;;  %v1061_v24 = vmax.f32 %v1028_v47, %v3922_v16  ;;  %v895_v54 = vmax.f32 %v862_v37, %v3952_v7 }
  0x6b   :  { %3157 = vpow2.f32 %v1924_v48  ;;  %v2148_v31 = vmul.f32 1.442695, %v2124_v59  ;;  %v937_v13 = vmax.f32 %v904_v57, %v3947_v18  ;;  %v2196_v29 = vadd.f32 %v2180_v53, %v2084_v0  ;;  %v4025_v53 = vld [vmem:[%s5043_s2 + $0xa8] sm:$0xff] }
  0x6c   :  { %v3142_v8 = vpop.eup %3141  ;;  %3159 = vpow2.f32 %v2036_v15  ;;  %v1094_v32 = vmax.f32 %v1061_v24, %v3938_v22  ;;  %v870_v37 = vmax.f32 %v3971_v28, %v3976_v36  ;;  %v928_v33 = vmax.f32 %v895_v54, %v3989_v52 }
  0x6d   :  { %v3144_v49 = vpop.eup %3143  ;;  %3161 = vpow2.f32 %v2148_v31  ;;  %v4028_v40 = vmax.f32 %v937_v13, %v3962_v27 }
  0x6e   :  { %v3146_v60 = vpop.eup %3145  ;;  %v1292_v39 = vadd.f32 %v3144_v49, %v3142_v8  ;;  %v4034_v62 = vmax.f32 %v1094_v32, %v3957_v42  ;;  %v4037_v21 = vmax.f32 %v870_v37, %v4003_v10  ;;  %v4044_v47 = vmax.f32 %v928_v33, %v4013_v20 }
  0x6f   :  { %v3148_v0 = vpop.eup %3147  ;;  %v1404_v46 = vmul.f32 2.0, %v3146_v60 }
  0x70   :  { %v3150_v59 = vpop.eup %3149  ;;  %v1388_v57 = vadd.f32 %v3146_v60, %v1292_v39  ;;  %v1516_v15 = vmul.f32 3.0, %v3148_v0  ;;  %v1143_v24 = vsub.f32 %v3695_v6, %v4034_v62  ;;  %v1223_v31 = vsub.f32 %v3702_v9, %v4034_v62 }
  0x71   :  { %v3152_v13 = vpop.eup %3151  ;;  %v1420_v54 = vadd.f32 %v3144_v49, %v1404_v46  ;;  %v1628_v8 = vmul.f32 4.0, %v3150_v59  ;;  %v1319_v32 = vsub.f32 %v3745_v5, %v4034_v62  ;;  %v1431_v37 = vsub.f32 %v3767_v30, %v4034_v62 }
  0x72   :  { %v1500_v33 = vadd.f32 %v3148_v0, %v1388_v57  ;;  %v1740_v3 = vmul.f32 5.0, %v3152_v13  ;;  %v1159_v34 = vmul.f32 10000.0, %v1143_v24  ;;  %v1239_v60 = vmul.f32 10000.0, %v1223_v31 }
  0x73   :  { %v3154_v39 = vpop.eup %3153  ;;  %v1532_v2 = vadd.f32 %v1516_v15, %v1420_v54  ;;  %v1335_v48 = vmul.f32 10000.0, %v1319_v32  ;;  %v1447_v6 = vmul.f32 10000.0, %v1431_v37  ;;  %v1543_v9 = vsub.f32 %v3847_v17, %v4034_v62 }
  0x74   :  { %v3156_v41 = vpop.eup %3155  ;;  %v1612_v49 = vadd.f32 %v3150_v59, %v1500_v33  ;;  %v1852_v46 = vmul.f32 6.0, %v3154_v39  ;;  %v1178_v4 = vmul.f32 1.442695, %v1159_v34  ;;  %v1258_v12 = vmul.f32 1.442695, %v1239_v60 }
  0x75   :  { %v3158_v5 = vpop.eup %3157  ;;  %v2213_v38 = vmul.f32 %v3156_v41, %v2196_v29  ;;  %v1644_v23 = vadd.f32 %v1628_v8, %v1532_v2  ;;  %v1354_v30 = vmul.f32 1.442695, %v1335_v48  ;;  %v1466_v0 = vmul.f32 1.442695, %v1447_v6 }
  0x76   :  { %v3160_v57 = vpop.eup %3159  ;;  %v1724_v24 = vadd.f32 %v3152_v13, %v1612_v49  ;;  %v1964_v31 = vmul.f32 7.0, %v3158_v5  ;;  %3163 = vpow2.f32 %v1178_v4  ;;  %v1559_v15 = vmul.f32 10000.0, %v1543_v9  ;;  %v4087_v13 = vld [vmem:[%s5043_s2 + $0x458] sm:$0xff] }
  0x77   :  { %v3162_v54 = vpop.eup %3161  ;;  %2348 = vmatmul.mubr.f32.vlgmr.msra.gmra.mrb[0].mxu1 %v2213_v38  ;;  %v1756_v32 = vadd.f32 %v1740_v3, %v1644_v23  ;;  %v2076_v37 = vmul.f32 8.0, %v3160_v57  ;;  %3165 = vpow2.f32 %v1258_v12  ;;  %v1655_v17 = vsub.f32 %v3868_v55, %v4034_v62  ;;  %v4071_v55 = vld [vmem:[%s5043_s2 + $0x358] sm:$0xff] }
  0x78   :  { %v5049_v34 = vpack.c.bf16 %v3677_v61, %v3669_v58  ;;  %v1836_v2 = vadd.f32 %v3154_v39, %v1724_v24  ;;  %v2188_v29 = vmul.f32 9.0, %v3162_v54  ;;  %3167 = vpow2.f32 %v1354_v30  ;;  %v4100_v39 = vld [vmem:[#allocation2 + $0xe0] sm:$0x3] }
  0x79   :  { %v1578_v41 = vmul.f32 1.442695, %v1559_v15  ;;  %v1868_v48 = vadd.f32 %v1852_v46, %v1756_v32  ;;  %3169 = vpow2.f32 %v1466_v0  ;;  %v1671_v4 = vmul.f32 10000.0, %v1655_v17  ;;  %v4105_v46 = vld [vmem:[%s5043_s2 + $0x310] sm:$0xff]  ;;  %v4126_v15 = vld [vmem:[%s5043_s2 + $0xe8] sm:$0xff] }
  0x7a   :  { %3034 = vmatpush1.bf16.xpose.msra.mxu1 %v5049_v34  ;;  %v1767_v38 = vsub.f32 %v3915_v45, %v4034_v62  ;;  %v5050_v12 = vpack.c.bf16 %v3933_v25, %v3931_v63  ;;  %v1948_v58 = vadd.f32 %v3158_v5, %v1836_v2  ;;  %v1879_v61 = vsub.f32 %v3922_v16, %v4034_v62  ;;  %v4082_v25 = vld [vmem:[%s5043_s2 + $0x3d8] sm:$0xff]  ;;  %v4115_v5 = vld [vmem:[%s5043_s2 + $0x128] sm:$0xff]  ;;  %v4138_v17 = vld [vmem:[%s5043_s2 + $0x250] sm:$0xff] }
  0x7b   :  { %3171 = vpow2.f32 %v1578_v41  ;;  %v1991_v23 = vsub.f32 %v3938_v22, %v4034_v62  ;;  %v1980_v3 = vadd.f32 %v1964_v31, %v1868_v48  ;;  %v1690_v59 = vmul.f32 1.442695, %v1671_v4  ;;  %v4121_v31 = vld [vmem:[%s5043_s2 + $0x68] sm:$0xff]  ;;  %v4146_v48 = vld [vmem:[%s5043_s2 + $0x390] sm:$0xff] }
  0x7c   :  { %3036 = vmatprep.subr.bf16.mxu1 %v5050_v12  ;;  %v1783_v45 = vmul.f32 10000.0, %v1767_v38  ;;  %v2103_v63 = vsub.f32 %v3957_v42, %v4034_v62  ;;  %v2060_v16 = vadd.f32 %v3160_v57, %v1948_v58  ;;  %v1895_v8 = vmul.f32 10000.0, %v1879_v61  ;;  %v4096_v42 = vld [vmem:[%s5043_s2 + $0x290] sm:$0xff]  ;;  %v4098_v62 = vld [vmem:[#allocation2 + $0x60] sm:$0xff]  ;;  %v4153_v4 = vld [vmem:[%s5043_s2 + $0x1a8] sm:$0xff] }
  0x7d   :  { %v2007_v33 = vmul.f32 10000.0, %v1991_v23  ;;  %v5051_v22 = vmax.f32 %v4028_v40, %v3984_v44  ;;  %v2092_v6 = vadd.f32 %v2076_v37, %v1980_v3  ;;  %3173 = vpow2.f32 %v1690_v59  ;;  %v4110_v40 = vld [vmem:[%s5043_s2 + $0x1d0] sm:$0xff] }
  0x7e   :  { %v1802_v9 = vmul.f32 1.442695, %v1783_v45  ;;  %v2119_v49 = vmul.f32 10000.0, %v2103_v63  ;;  %v2172_v30 = vadd.f32 %v3162_v54, %v2060_v16  ;;  %v1914_v0 = vmul.f32 1.442695, %v1895_v8  ;;  %v4131_v54 = vld [vmem:[%s5043_s2 + $0x4d8] sm:$0xff] }
  0x7f   :  { %v1036_v60 = vmax.f32 %v5051_v22, %v4071_v55  ;;  %v2026_v57 = vmul.f32 1.442695, %v2007_v33  ;;  %v994_v37 = vmax.f32 %v4044_v47, %v4096_v42  ;;  %v936_v47 = vmax.f32 %v4037_v21, %v4110_v40 }
  0x80   :  { %3175 = vpow2.f32 %v1802_v9  ;;  %v2138_v32 = vmul.f32 1.442695, %v2119_v49  ;;  %v3164_v2 = vpop.eup %3163  ;;  %v5052_v38 = vmax.f32 %v4020_v50, %v4025_v53  ;;  %v2204_v61 = vadd.f32 %v2188_v29, %v2092_v6 }
  0x81   :  { %v1069_v24 = vmax.f32 %v1036_v60, %v4082_v25  ;;  %3177 = vrcp.f32 %v2172_v30  ;;  %v3166_v58 = vpop.eup %3165  ;;  %v4162_v23 = vmax.f32 %v994_v37, %v4105_v46  ;;  %v4170_v63 = vmax.f32 %v936_v47, %v4138_v17 }
  0x82   :  { %v4159_v12 = vmax.f32 %v5052_v38, %v4115_v5  ;;  %3179 = vpow2.f32 %v1914_v0  ;;  %v3168_v3 = vpop.eup %3167  ;;  %v1287_v59 = vadd.f32 %v3166_v58, %v3164_v2 }
  0x83   :  { %v1102_v41 = vmax.f32 %v1069_v24, %v4087_v13  ;;  %3181 = vpow2.f32 %v2026_v57  ;;  %v3170_v16 = vpop.eup %3169  ;;  %v1399_v8 = vmul.f32 2.0, %v3168_v3  ;;  %v1060_v29 = vmax.f32 %v4162_v23, %v4146_v48 }
  0x84   :  { %3183 = vpow2.f32 %v2138_v32  ;;  %v1383_v60 = vadd.f32 %v3168_v3, %v1287_v59  ;;  %v1511_v6 = vmul.f32 3.0, %v3170_v16 }
  0x85   :  { %v4167_v45 = vmax.f32 %v1102_v41, %v4131_v54  ;;  %v3172_v22 = vpop.eup %3171  ;;  %v1415_v30 = vadd.f32 %v3166_v58, %v1399_v8 }
  0x86   :  { %v1623_v0 = vmul.f32 4.0, %v3172_v22  ;;  %v1495_v32 = vadd.f32 %v3170_v16, %v1383_v60 }
  0x87   :  { %v1151_v9 = vsub.f32 %v3857_v26, %v4167_v45  ;;  %v1231_v49 = vsub.f32 %v3862_v51, %v4167_v45  ;;  %v1327_v57 = vsub.f32 %v3927_v14, %v4167_v45  ;;  %v1439_v24 = vsub.f32 %v3947_v18, %v4167_v45  ;;  %v3174_v47 = vpop.eup %3173 }
  0x88   :  { %v1551_v41 = vsub.f32 %v3962_v27, %v4167_v45  ;;  %v1527_v38 = vadd.f32 %v1511_v6, %v1415_v30  ;;  %v1663_v51 = vsub.f32 %v3984_v44, %v4167_v45  ;;  %v1607_v58 = vadd.f32 %v3172_v22, %v1495_v32 }
  0x89   :  { %v1167_v37 = vmul.f32 10000.0, %v1151_v9  ;;  %v1247_v2 = vmul.f32 10000.0, %v1231_v49  ;;  %v1343_v26 = vmul.f32 10000.0, %v1327_v57  ;;  %v1455_v3 = vmul.f32 10000.0, %v1439_v24 }
  0x8a   :  { %v1735_v59 = vmul.f32 5.0, %v3174_v47  ;;  %v3176_v34 = vpop.eup %3175  ;;  %v1639_v21 = vadd.f32 %v1623_v0, %v1527_v38  ;;  %v1567_v60 = vmul.f32 10000.0, %v1551_v41  ;;  %v1719_v49 = vadd.f32 %v3174_v47, %v1607_v58 }
  0x8b   :  { %v1194_v8 = vmul.f32 1.442695, %v1167_v37  ;;  %v1274_v14 = vmul.f32 1.442695, %v1247_v2  ;;  %v1370_v18 = vmul.f32 1.442695, %v1343_v26  ;;  %v3178_v9 = vpop.eup %3177  ;;  %v1775_v41 = vsub.f32 %v4071_v55, %v4167_v45 }
  0x8c   :  { %v1482_v16 = vmul.f32 1.442695, %v1455_v3  ;;  %v1847_v33 = vmul.f32 6.0, %v3176_v34  ;;  %v1679_v27 = vmul.f32 10000.0, %v1663_v51  ;;  %v3180_v6 = vpop.eup %3179  ;;  %v2229_v30 = vmul.f32 %v3178_v9, %v2204_v61  ;;  %v4193_v61 = vld [vmem:[%s5043_s2 + $0x410] sm:$0xff] }
  0x8d   :  { %3185 = vpow2.f32 %v1194_v8  ;;  %v1751_v57 = vadd.f32 %v1735_v59, %v1639_v21  ;;  %v1594_v24 = vmul.f32 1.442695, %v1567_v60  ;;  %v3182_v44 = vpop.eup %3181  ;;  %v1831_v22 = vadd.f32 %v3176_v34, %v1719_v49  ;;  %v4203_v26 = vld [vmem:[%s5043_s2 + $0x2d0] sm:$0xff] }
  0x8e   :  { %3187 = vpow2.f32 %v1274_v14  ;;  %v1959_v32 = vmul.f32 7.0, %v3180_v6  ;;  %v1706_v37 = vmul.f32 1.442695, %v1679_v27  ;;  %v3184_v2 = vpop.eup %3183  ;;  %2628 = vmatmul.mubr.f32.vlgmr.msra.gmra.mrb[0].mxu0 %v2229_v30  ;;  %v2071_v38 = vmul.f32 8.0, %v3182_v44 }
  0x8f   :  { %3189 = vpow2.f32 %v1370_v18  ;;  %v1863_v0 = vadd.f32 %v1847_v33, %v1751_v57  ;;  %v5053_v21 = vpack.c.bf16 %v3721_v11, %v3719_v43  ;;  %v1943_v34 = vadd.f32 %v3180_v6, %v1831_v22  ;;  %v4210_v43 = vld [vmem:[%s5043_s2 + $0x490] sm:$0xff] }
  0x90   :  { %3191 = vpow2.f32 %v1482_v16  ;;  %v2183_v47 = vmul.f32 9.0, %v3184_v2  ;;  %v1887_v33 = vsub.f32 %v4082_v25, %v4167_v45  ;;  %v1791_v3 = vmul.f32 10000.0, %v1775_v41 }
  0x91   :  { %3050 = vmatpush1.bf16.xpose.msra.mxu0 %v5053_v21  ;;  %3193 = vpow2.f32 %v1594_v24  ;;  %v1975_v55 = vadd.f32 %v1959_v32, %v1863_v0  ;;  %v1999_v51 = vsub.f32 %v4087_v13, %v4167_v45  ;;  %v5054_v11 = vpack.c.bf16 %v4007_v1, %v4005_v56  ;;  %v4224_v13 = vld [vmem:[%s5043_s2 + $0x350] sm:$0xff] }
  0x92   :  { %3195 = vpow2.f32 %v1706_v37  ;;  %v2055_v25 = vadd.f32 %v3182_v44, %v1943_v34  ;;  %v1903_v58 = vmul.f32 10000.0, %v1887_v33  ;;  %v2111_v59 = vsub.f32 %v4131_v54, %v4167_v45 }
  0x93   :  { %3052 = vmatprep.subr.bf16.mxu0 %v5054_v11  ;;  %v1093_v8 = vmax.f32 %v1060_v29, %v4193_v61  ;;  %v2087_v14 = vadd.f32 %v2071_v38, %v1975_v55  ;;  %v1818_v18 = vmul.f32 1.442695, %v1791_v3  ;;  %v2015_v16 = vmul.f32 10000.0, %v1999_v51 }
  0x94   :  { %v1002_v56 = vmax.f32 %v4170_v63, %v4203_v26  ;;  %v2167_v1 = vadd.f32 %v3184_v2, %v2055_v25  ;;  %v1930_v60 = vmul.f32 1.442695, %v1903_v58  ;;  %v2127_v9 = vmul.f32 10000.0, %v2111_v59 }
  0x95   :  { %v4229_v54 = vmax.f32 %v1093_v8, %v4210_v43  ;;  %v2199_v45 = vadd.f32 %v2183_v47, %v2087_v14  ;;  %3197 = vpow2.f32 %v1818_v18  ;;  %v2042_v23 = vmul.f32 1.442695, %v2015_v16 }
  0x96   :  { %v4232_v29 = vmax.f32 %v1002_v56, %v4224_v13  ;;  %3199 = vrcp.f32 %v2167_v1  ;;  %v2154_v27 = vmul.f32 1.442695, %v2127_v9 }
  0x97   :  { %v3186_v49 = vpop.eup %3185  ;;  %v1142_v6 = vsub.f32 %v3873_v35, %v4229_v54  ;;  %v1222_v63 = vsub.f32 %v3878_v19, %v4229_v54  ;;  %3201 = vpow2.f32 %v1930_v60  ;;  %v1318_v57 = vsub.f32 %v3952_v7, %v4229_v54 }
  0x98   :  { %v3188_v30 = vpop.eup %3187  ;;  %v1430_v24 = vsub.f32 %v3989_v52, %v4229_v54  ;;  %v1542_v44 = vsub.f32 %v4013_v20, %v4229_v54  ;;  %3203 = vpow2.f32 %v2042_v23  ;;  %v1654_v59 = vsub.f32 %v4096_v42, %v4229_v54 }
  0x99   :  { %v3190_v22 = vpop.eup %3189  ;;  %v1295_v32 = vadd.f32 %v3188_v30, %v3186_v49  ;;  %v1158_v37 = vmul.f32 10000.0, %v1142_v6  ;;  %v1238_v2 = vmul.f32 10000.0, %v1222_v63  ;;  %3205 = vpow2.f32 %v2154_v27 }
  0x9a   :  { %v3192_v35 = vpop.eup %3191  ;;  %v1407_v0 = vmul.f32 2.0, %v3190_v22  ;;  %v1334_v19 = vmul.f32 10000.0, %v1318_v57  ;;  %v1446_v38 = vmul.f32 10000.0, %v1430_v24  ;;  %v1558_v25 = vmul.f32 10000.0, %v1542_v44 }
  0x9b   :  { %v3194_v41 = vpop.eup %3193  ;;  %v1391_v21 = vadd.f32 %v3190_v22, %v1295_v32  ;;  %v1519_v34 = vmul.f32 3.0, %v3192_v35  ;;  %v1176_v7 = vmul.f32 1.442695, %v1158_v37  ;;  %v1256_v47 = vmul.f32 1.442695, %v1238_v2  ;;  %v4255_v37 = vld [vmem:[%s5043_s2 + $0x3d0] sm:$0xff] }
  0x9c   :  { %v3196_v33 = vpop.eup %3195  ;;  %v1423_v52 = vadd.f32 %v3188_v30, %v1407_v0  ;;  %v1631_v55 = vmul.f32 4.0, %v3194_v41  ;;  %v1352_v3 = vmul.f32 1.442695, %v1334_v19  ;;  %v1464_v20 = vmul.f32 1.442695, %v1446_v38  ;;  %v4262_v19 = vld [vmem:[%s5043_s2 + $0x228] sm:$0xff] }
  0x9d   :  { %v1503_v51 = vadd.f32 %v3192_v35, %v1391_v21  ;;  %v1743_v11 = vmul.f32 5.0, %v3196_v33  ;;  %3207 = vpow2.f32 %v1176_v7  ;;  %v1766_v8 = vsub.f32 %v4105_v46, %v4229_v54 }
  0x9e   :  { %v1535_v58 = vadd.f32 %v1519_v34, %v1423_v52  ;;  %3209 = vpow2.f32 %v1256_v47  ;;  %v1576_v18 = vmul.f32 1.442695, %v1558_v25  ;;  %v1878_v16 = vsub.f32 %v4146_v48, %v4229_v54  ;;  %v4272_v34 = vld [vmem:[%s5043_s2 + $0x450] sm:$0xff]  ;;  %v4289_v52 = vld [vmem:[%s5043_s2 + $0x2a8] sm:$0xff] }
  0x9f   :  { %v1615_v14 = vadd.f32 %v3194_v41, %v1503_v51  ;;  %3211 = vpow2.f32 %v1352_v3  ;;  %v3198_v56 = vpop.eup %3197  ;;  %v1670_v60 = vmul.f32 10000.0, %v1654_v59  ;;  %v1782_v9 = vmul.f32 10000.0, %v1766_v8  ;;  %v4294_v51 = vld [vmem:[%s5043_s2 + $0x4d0] sm:$0xff] }
  0xa0   :  { %v1647_v1 = vadd.f32 %v1631_v55, %v1535_v58  ;;  %3213 = vpow2.f32 %v1464_v20  ;;  %v3200_v23 = vpop.eup %3199  ;;  %v1855_v27 = vmul.f32 6.0, %v3198_v56  ;;  %v1894_v6 = vmul.f32 10000.0, %v1878_v16  ;;  %v4310_v16 = vld [vmem:[%s5043_s2 + $0x328] sm:$0xff] }
  0xa1   :  { %v1727_v49 = vadd.f32 %v3196_v33, %v1615_v14  ;;  %3215 = vpow2.f32 %v1576_v18  ;;  %v3202_v42 = vpop.eup %3201  ;;  %v2219_v63 = vmul.f32 %v3200_v23, %v2199_v45  ;;  %v1688_v46 = vmul.f32 1.442695, %v1670_v60 }
  0xa2   :  { %v1759_v30 = vadd.f32 %v1743_v11, %v1647_v1  ;;  %v1800_v57 = vmul.f32 1.442695, %v1782_v9  ;;  %v3204_v24 = vpop.eup %3203  ;;  %v1967_v22 = vmul.f32 7.0, %v3202_v42  ;;  %v1912_v32 = vmul.f32 1.442695, %v1894_v6 }
  0xa3   :  { %v1839_v44 = vadd.f32 %v3198_v56, %v1727_v49  ;;  %v1990_v48 = vsub.f32 %v4193_v61, %v4229_v54  ;;  %v3206_v2 = vpop.eup %3205  ;;  %2417 = vmatprep.mubr.f32.mxu1 %v2219_v63  ;;  %v2079_v0 = vmul.f32 8.0, %v3204_v24  ;;  %3217 = vpow2.f32 %v1688_v46  ;;  %v4267_v61 = vld [vmem:[%s5043_s2 + $0x168] sm:$0xff] }
  0xa4   :  { %v1871_v35 = vadd.f32 %v1855_v27, %v1759_v30  ;;  %v2102_v45 = vsub.f32 %v4210_v43, %v4229_v54  ;;  %v2191_v41 = vmul.f32 9.0, %v3206_v2  ;;  %3219 = vpow2.f32 %v1800_v57  ;;  %v4277_v43 = vld [vmem:[%s5043_s2 + $0x20] sm:$0xff] }
  0xa5   :  { %v1951_v38 = vadd.f32 %v3202_v42, %v1839_v44  ;;  %v2006_v21 = vmul.f32 10000.0, %v1990_v48  ;;  %v4282_v54 = vld [vmem:[%s5043_s2 + $0xa0] sm:$0xff]  ;;  %3221 = vpow2.f32 %v1912_v32  ;;  %v1068_v33 = vmax.f32 %v4232_v29, %v4255_v37 }
  0xa6   :  { %v1983_v7 = vadd.f32 %v1967_v22, %v1871_v35  ;;  %v2118_v47 = vmul.f32 10000.0, %v2102_v45  ;;  %v5055_v11 = vmax.f32 %v4159_v12, %v4153_v4  ;;  %v5056_v29 = vmax.f32 %v4121_v31, %v4126_v15 }
  0xa7   :  { %v3208_v55 = vpop.eup %3207  ;;  %v2063_v3 = vadd.f32 %v3204_v24, %v1951_v38  ;;  %v2024_v20 = vmul.f32 1.442695, %v2006_v21  ;;  %v1101_v18 = vmax.f32 %v1068_v33, %v4272_v34  ;;  %v864_v12 = vmax.f32 %v4277_v43, %v4282_v54 }
  0xa8   :  { %v964_v25 = vmax.f32 %v5055_v11, %v4262_v19  ;;  %v4304_v58 = vmax.f32 %v5056_v29, %v4267_v61  ;;  %v3210_v59 = vpop.eup %3209  ;;  %v2095_v8 = vadd.f32 %v2079_v0, %v1983_v7  ;;  %v2136_v14 = vmul.f32 1.442695, %v2118_v47 }
  0xa9   :  { %v3212_v56 = vpop.eup %3211  ;;  %v2175_v1 = vadd.f32 %v3206_v2, %v2063_v3  ;;  %v1286_v60 = vadd.f32 %v3210_v59, %v3208_v55  ;;  %3223 = vpow2.f32 %v2024_v20  ;;  %v4316_v6 = vmax.f32 %v1101_v18, %v4294_v51 }
  0xaa   :  { %v997_v9 = vmax.f32 %v964_v25, %v4289_v52  ;;  %v3214_v23 = vpop.eup %3213  ;;  %v2207_v49 = vadd.f32 %v2191_v41, %v2095_v8  ;;  %v1398_v27 = vmul.f32 2.0, %v3212_v56  ;;  %3225 = vpow2.f32 %v2136_v14 }
  0xab   :  { %v3216_v42 = vpop.eup %3215  ;;  %3227 = vrcp.f32 %v2175_v1  ;;  %v1382_v63 = vadd.f32 %v3212_v56, %v1286_v60  ;;  %v1510_v30 = vmul.f32 3.0, %v3214_v23  ;;  %v1150_v44 = vsub.f32 %v3971_v28, %v4316_v6 }
  0xac   :  { %v4319_v46 = vmax.f32 %v997_v9, %v4310_v16  ;;  %v1414_v57 = vadd.f32 %v3210_v59, %v1398_v27  ;;  %v1622_v24 = vmul.f32 4.0, %v3216_v42  ;;  %v1230_v22 = vsub.f32 %v3976_v36, %v4316_v6 }
  0xad   :  { %v1494_v32 = vadd.f32 %v3214_v23, %v1382_v63  ;;  %v1326_v48 = vsub.f32 %v4003_v10, %v4316_v6  ;;  %v1438_v2 = vsub.f32 %v4110_v40, %v4316_v6  ;;  %v1550_v35 = vsub.f32 %v4138_v17, %v4316_v6  ;;  %v3218_v0 = vpop.eup %3217 }
  0xae   :  { %v1526_v45 = vadd.f32 %v1510_v30, %v1414_v57  ;;  %v1166_v38 = vmul.f32 10000.0, %v1150_v44  ;;  %v1246_v41 = vmul.f32 10000.0, %v1230_v22  ;;  %v1662_v28 = vsub.f32 %v4203_v26, %v4316_v6  ;;  %v3220_v21 = vpop.eup %3219 }
  0xaf   :  { %v1606_v7 = vadd.f32 %v3216_v42, %v1494_v32  ;;  %v1734_v36 = vmul.f32 5.0, %v3218_v0  ;;  %v1342_v47 = vmul.f32 10000.0, %v1326_v48  ;;  %v1454_v33 = vmul.f32 10000.0, %v1438_v2  ;;  %v3222_v55 = vpop.eup %3221 }
  0xb0   :  { %v1638_v10 = vadd.f32 %v1622_v24, %v1526_v45  ;;  %v1846_v3 = vmul.f32 6.0, %v3220_v21  ;;  %v1192_v20 = vmul.f32 1.442695, %v1166_v38  ;;  %v1272_v40 = vmul.f32 1.442695, %v1246_v41  ;;  %v4340_v24 = vld [vmem:[%s5043_s2 + $0x3a8] sm:$0xff] }
  0xb1   :  { %v1718_v11 = vadd.f32 %v3218_v0, %v1606_v7  ;;  %v1958_v25 = vmul.f32 7.0, %v3222_v55  ;;  %v1368_v17 = vmul.f32 1.442695, %v1342_v47  ;;  %v1480_v29 = vmul.f32 1.442695, %v1454_v33 }
  0xb2   :  { %v1750_v59 = vadd.f32 %v1734_v36, %v1638_v10  ;;  %3229 = vpow2.f32 %v1192_v20  ;;  %v1566_v8 = vmul.f32 10000.0, %v1550_v35  ;;  %v1678_v14 = vmul.f32 10000.0, %v1662_v28  ;;  %v4352_v35 = vld [vmem:[%s5043_s2 + $0x428] sm:$0xff]  ;;  %v4356_v0 = vld [vmem:[#allocation2 + $0xb8] sm:$0x3]  ;;  %v4395_v20 = vld [vmem:[%s5043_s2 + $0x60] sm:$0xff] }
  0xb3   :  { %v3224_v18 = vpop.eup %3223  ;;  %v1830_v26 = vadd.f32 %v3220_v21, %v1718_v11  ;;  %3231 = vpow2.f32 %v1272_v40  ;;  %v1774_v56 = vsub.f32 %v4224_v13, %v4316_v6  ;;  %v1886_v1 = vsub.f32 %v4255_v37, %v4316_v6  ;;  %v4345_v37 = vld [vmem:[%s5043_s2 + $0x1e8] sm:$0xff]  ;;  %v4370_v21 = vld [vmem:[%s5043_s2 + $0x120] sm:$0xff] }
  0xb4   :  { %v3226_v60 = vpop.eup %3225  ;;  %v1862_v9 = vadd.f32 %v1846_v3, %v1750_v59  ;;  %v2070_v23 = vmul.f32 8.0, %v3224_v18  ;;  %3233 = vpow2.f32 %v1368_v17  ;;  %v1592_v27 = vmul.f32 1.442695, %v1566_v8  ;;  %v4390_v3 = vld [vmem:[%s5043_s2 + $0x1a0] sm:$0xff] }
  0xb5   :  { %v3228_v42 = vpop.eup %3227  ;;  %v1942_v63 = vadd.f32 %v3222_v55, %v1830_v26  ;;  %v2182_v30 = vmul.f32 9.0, %v3226_v60  ;;  %3235 = vpow2.f32 %v1480_v29  ;;  %v1704_v57 = vmul.f32 1.442695, %v1678_v14 }
  0xb6   :  { %v2235_v44 = vmul.f32 %v3228_v42, %v2207_v49  ;;  %v1974_v13 = vadd.f32 %v1958_v25, %v1862_v9  ;;  %3237 = vpow2.f32 %v1592_v27  ;;  %v1790_v22 = vmul.f32 10000.0, %v1774_v56  ;;  %v4354_v49 = vld [vmem:[#allocation2 + $0x38] sm:$0xff] }
  0xb7   :  { %v2054_v32 = vadd.f32 %v3224_v18, %v1942_v63  ;;  %3239 = vpow2.f32 %v1704_v57  ;;  %v1902_v48 = vmul.f32 10000.0, %v1886_v1  ;;  %v1998_v2 = vsub.f32 %v4272_v34, %v4316_v6  ;;  %v4365_v34 = vld [vmem:[%s5043_s2 + $0x268] sm:$0xff] }
  0xb8   :  { %2697 = vmatprep.mubr.f32.mxu0 %v2235_v44  ;;  %v2086_v45 = vadd.f32 %v2070_v23, %v1974_v13  ;;  %v1816_v38 = vmul.f32 1.442695, %v1790_v22  ;;  %v2110_v41 = vsub.f32 %v4294_v51, %v4316_v6  ;;  %v1063_v28 = vmax.f32 %v4319_v46, %v4340_v24  ;;  %v4375_v51 = vld [vmem:[%s5043_s2 + $0x4a8] sm:$0xff] }
  0xb9   :  { %v2166_v7 = vadd.f32 %v3226_v60, %v2054_v32  ;;  %v1928_v36 = vmul.f32 1.442695, %v1902_v48  ;;  %v2014_v47 = vmul.f32 10000.0, %v1998_v2  ;;  %v4380_v6 = vld [vmem:[%s5043_s2 + $0x2e8] sm:$0xff]  ;;  %v939_v46 = vmax.f32 %v4304_v58, %v4345_v37  ;;  %v4400_v58 = vld [vmem:[%s5043_s2 + $0xe0] sm:$0xff] }
  0xba   :  { %3241 = vpow2.f32 %v1816_v38  ;;  %v2126_v33 = vmul.f32 10000.0, %v2110_v41  ;;  %v1096_v55 = vmax.f32 %v1063_v28, %v4352_v35  ;;  %v3039_v10 = vpack.c.bf16 %v4356_v0, %v4354_v49  ;;  %v4473_v49 = vld [vmem:[%s5043_s2 + $0x2a0] sm:$0xff] }
  0xbb   :  { %3243 = vrcp.f32 %v2166_v7  ;;  %v2040_v40 = vmul.f32 1.442695, %v2014_v47  ;;  %v4403_v11 = vmax.f32 %v939_v46, %v4365_v34  ;;  %v4409_v25 = vmax.f32 %v864_v12, %v4370_v21 }
  0xbc   :  { %v3230_v17 = vpop.eup %3229  ;;  %v2198_v29 = vadd.f32 %v2182_v30, %v2086_v45  ;;  %3245 = vpow2.f32 %v1928_v36  ;;  %v2152_v59 = vmul.f32 1.442695, %v2126_v33  ;;  %v4412_v8 = vmax.f32 %v1096_v55, %v4375_v51 }
  0xbd   :  { %v3232_v14 = vpop.eup %3231  ;;  %3247 = vpow2.f32 %v2040_v40  ;;  %v1005_v18 = vmax.f32 %v4403_v11, %v4380_v6  ;;  %v930_v26 = vmax.f32 %v4409_v25, %v4390_v3  ;;  %v872_v56 = vmax.f32 %v4395_v20, %v4400_v58  ;;  %v4487_v11 = vld [vmem:[%s5043_s2 + $0x1e0] sm:$0xff] }
  0xbe   :  { %v3234_v12 = vpop.eup %3233  ;;  %v1294_v1 = vadd.f32 %v3232_v14, %v3230_v17  ;;  %3249 = vpow2.f32 %v2152_v59  ;;  %v1145_v60 = vsub.f32 %v4020_v50, %v4412_v8  ;;  %v1225_v9 = vsub.f32 %v4025_v53, %v4412_v8 }
  0xbf   :  { %v3236_v23 = vpop.eup %3235  ;;  %v1406_v27 = vmul.f32 2.0, %v3234_v12  ;;  %v1321_v42 = vsub.f32 %v4115_v5, %v4412_v8  ;;  %v1433_v63 = vsub.f32 %v4153_v4, %v4412_v8  ;;  %v1545_v30 = vsub.f32 %v4262_v19, %v4412_v8 }
  0xc0   :  { %v3238_v57 = vpop.eup %3237  ;;  %v1390_v44 = vadd.f32 %v3234_v12, %v1294_v1  ;;  %v1518_v13 = vmul.f32 3.0, %v3236_v23  ;;  %v1161_v22 = vmul.f32 10000.0, %v1145_v60  ;;  %v1241_v32 = vmul.f32 10000.0, %v1225_v9 }
  0xc1   :  { %v3240_v50 = vpop.eup %3239  ;;  %v1422_v48 = vadd.f32 %v3232_v14, %v1406_v27  ;;  %v1630_v2 = vmul.f32 4.0, %v3238_v57  ;;  %v1337_v53 = vmul.f32 10000.0, %v1321_v42  ;;  %v1449_v45 = vmul.f32 10000.0, %v1433_v63 }
  0xc2   :  { %v1502_v38 = vadd.f32 %v3236_v23, %v1390_v44  ;;  %v1742_v41 = vmul.f32 5.0, %v3240_v50  ;;  %v1182_v28 = vmul.f32 1.442695, %v1161_v22  ;;  %v1262_v5 = vmul.f32 1.442695, %v1241_v32  ;;  %v4437_v44 = vld [vmem:[%s5043_s2 + $0x368] sm:$0xff] }
  0xc3   :  { %v1534_v7 = vadd.f32 %v1518_v13, %v1422_v48  ;;  %v1358_v36 = vmul.f32 1.442695, %v1337_v53  ;;  %v1470_v4 = vmul.f32 1.442695, %v1449_v45  ;;  %v1561_v47 = vmul.f32 10000.0, %v1545_v30  ;;  %v5058_v13 = vld [vmem:[#allocation9_spill] sm:$0xff] }
  0xc4   :  { %v3242_v46 = vpop.eup %3241  ;;  %v1614_v19 = vadd.f32 %v3238_v57, %v1502_v38  ;;  %3251 = vpow2.f32 %v1182_v28  ;;  %v1657_v33 = vsub.f32 %v4289_v52, %v4412_v8  ;;  %v1769_v55 = vsub.f32 %v4310_v16, %v4412_v8  ;;  %v4447_v53 = vld [vmem:[%s5043_s2 + $0x220] sm:$0xff] }
  0xc5   :  { %v3244_v40 = vpop.eup %3243  ;;  %v1646_v17 = vadd.f32 %v1630_v2, %v1534_v7  ;;  %v1854_v59 = vmul.f32 6.0, %v3242_v46  ;;  %3253 = vpow2.f32 %v1262_v5  ;;  %v1582_v14 = vmul.f32 1.442695, %v1561_v47  ;;  %v4464_v28 = vld [vmem:[%s5043_s2 + $0x160] sm:$0xff]  ;;  %v4478_v7 = vld [vmem:[%s5043_s2 + $0x468] sm:$0xff] }
  0xc6   :  { %v3246_v12 = vpop.eup %3245  ;;  %v2217_v1 = vmul.f32 %v3244_v40, %v2198_v29  ;;  %v1726_v60 = vadd.f32 %v3240_v50, %v1614_v19  ;;  %3255 = vpow2.f32 %v1358_v36  ;;  %v1673_v9 = vmul.f32 10000.0, %v1657_v33  ;;  %v5057_v29 = vld [vmem:[#allocation10_spill] sm:$0xff]  ;;  %v4501_v19 = vld [vmem:[#allocation2 + $0xf8] sm:$0x3] }
  0xc7   :  { %v3248_v23 = vpop.eup %3247  ;;  %v1758_v27 = vadd.f32 %v1742_v41, %v1646_v17  ;;  %v1966_v42 = vmul.f32 7.0, %v3246_v12  ;;  %3257 = vpow2.f32 %v1470_v4  ;;  %v1785_v63 = vmul.f32 10000.0, %v1769_v55 }
  0xc8   :  { %v3250_v30 = vpop.eup %3249  ;;  %2418 = vmatmul.mubr.f32.vlgmr.msra.gmra.mrb[0].mxu1 %v2217_v1  ;;  %v1838_v52 = vadd.f32 %v3242_v46, %v1726_v60  ;;  %v2078_v57 = vmul.f32 8.0, %v3248_v23  ;;  %3259 = vpow2.f32 %v1582_v14  ;;  %v1694_v16 = vmul.f32 1.442695, %v1673_v9  ;;  %v4493_v46 = vld [vmem:[%s5043_s2 + $0x320] sm:$0xff] }
  0xc9   :  { %v5059_v22 = vpack.c.bf16 %v5057_v29, %v5058_v13  ;;  %v1870_v32 = vadd.f32 %v1854_v59, %v1758_v27  ;;  %v2190_v50 = vmul.f32 9.0, %v3250_v30  ;;  %v1806_v48 = vmul.f32 1.442695, %v1785_v63  ;;  %v4506_v59 = vld [vmem:[%s5043_s2 + $0x4e8] sm:$0xff]  ;;  %v4518_v9 = vld [vmem:[%s5043_s2 + $0x3a0] sm:$0xff] }
  0xca   :  { %v1881_v2 = vsub.f32 %v4340_v24, %v4412_v8  ;;  %v1950_v45 = vadd.f32 %v3246_v12, %v1838_v52  ;;  %3261 = vpow2.f32 %v1694_v16  ;;  %v1993_v38 = vsub.f32 %v4352_v35, %v4412_v8  ;;  %v4459_v24 = vld [vmem:[%s5043_s2 + $0x3e8] sm:$0xff]  ;;  %v4512_v12 = vld [vmem:[%s5043_s2 + $0x260] sm:$0xff] }
  0xcb   :  { %3038 = vmatpush1.bf16.xpose.msra.mxu1 %v5059_v22  ;;  %v2105_v41 = vsub.f32 %v4375_v51, %v4412_v8  ;;  %v1982_v5 = vadd.f32 %v1966_v42, %v1870_v32  ;;  %3263 = vpow2.f32 %v1806_v48  ;;  %v1038_v51 = vmax.f32 %v1005_v18, %v4437_v44 }
  0xcc   :  { %3040 = vmatprep.subr.bf16.mxu1 %v3039_v10  ;;  %v1897_v35 = vmul.f32 10000.0, %v1881_v2  ;;  %v2062_v0 = vadd.f32 %v3248_v23, %v1950_v45  ;;  %v2009_v10 = vmul.f32 10000.0, %v1993_v38  ;;  %v963_v36 = vmax.f32 %v930_v26, %v4447_v53  ;;  %v4499_v26 = vld [vmem:[#allocation2 + $0x78] sm:$0xff] }
  0xcd   :  { %v2121_v8 = vmul.f32 10000.0, %v2105_v41  ;;  %v2094_v18 = vadd.f32 %v2078_v57, %v1982_v5  ;;  %v1071_v47 = vmax.f32 %v1038_v51, %v4459_v24  ;;  %v905_v25 = vmax.f32 %v872_v56, %v4464_v28 }
  0xce   :  { %v1918_v4 = vmul.f32 1.442695, %v1897_v35  ;;  %v3252_v33 = vpop.eup %3251  ;;  %v2174_v55 = vadd.f32 %v3250_v30, %v2062_v0  ;;  %v2030_v40 = vmul.f32 1.442695, %v2009_v10  ;;  %v996_v14 = vmax.f32 %v963_v36, %v4473_v49 }
  0xcf   :  { %v2142_v17 = vmul.f32 1.442695, %v2121_v8  ;;  %v3254_v56 = vpop.eup %3253  ;;  %v2206_v1 = vadd.f32 %v2190_v50, %v2094_v18  ;;  %v1104_v60 = vmax.f32 %v1071_v47, %v4478_v7  ;;  %v938_v23 = vmax.f32 %v905_v25, %v4487_v11 }
  0xd0   :  { %3265 = vpow2.f32 %v1918_v4  ;;  %v3256_v27 = vpop.eup %3255  ;;  %v1289_v42 = vadd.f32 %v3254_v56, %v3252_v33  ;;  %v4522_v63 = vmax.f32 %v996_v14, %v4493_v46  ;;  %v3055_v30 = vpack.c.bf16 %v4501_v19, %v4499_v26 }
  0xd1   :  { %3267 = vrcp.f32 %v2174_v55  ;;  %v3258_v52 = vpop.eup %3257  ;;  %v1401_v57 = vmul.f32 2.0, %v3256_v27  ;;  %v4527_v16 = vmax.f32 %v1104_v60, %v4506_v59  ;;  %v4530_v29 = vmax.f32 %v938_v23, %v4512_v12 }
  0xd2   :  { %3269 = vpow2.f32 %v2030_v40  ;;  %v3260_v13 = vpop.eup %3259  ;;  %v1385_v22 = vadd.f32 %v3256_v27, %v1289_v42  ;;  %v1513_v32 = vmul.f32 3.0, %v3258_v52  ;;  %v1062_v50 = vmax.f32 %v4522_v63, %v4518_v9 }
  0xd3   :  { %3271 = vpow2.f32 %v2142_v17  ;;  %v1417_v48 = vadd.f32 %v3254_v56, %v1401_v57  ;;  %v1625_v2 = vmul.f32 4.0, %v3260_v13  ;;  %v1153_v45 = vsub.f32 %v4121_v31, %v4527_v16 }
  0xd4   :  { %v1233_v38 = vsub.f32 %v4126_v15, %v4527_v16  ;;  %v3262_v41 = vpop.eup %3261  ;;  %v1497_v5 = vadd.f32 %v3258_v52, %v1385_v22  ;;  %v1329_v35 = vsub.f32 %v4267_v61, %v4527_v16  ;;  %v1441_v51 = vsub.f32 %v4345_v37, %v4527_v16 }
  0xd5   :  { %v1553_v0 = vsub.f32 %v4365_v34, %v4527_v16  ;;  %v3264_v10 = vpop.eup %3263  ;;  %v1529_v8 = vadd.f32 %v1513_v32, %v1417_v48  ;;  %v1737_v36 = vmul.f32 5.0, %v3262_v41  ;;  %v1169_v18 = vmul.f32 10000.0, %v1153_v45 }
  0xd6   :  { %v1249_v4 = vmul.f32 10000.0, %v1233_v38  ;;  %v1609_v31 = vadd.f32 %v3260_v13, %v1497_v5  ;;  %v1849_v47 = vmul.f32 6.0, %v3264_v10  ;;  %v1345_v25 = vmul.f32 10000.0, %v1329_v35  ;;  %v4551_v5 = vld [vmem:[%s5043_s2 + $0x420] sm:$0xff] }
  0xd7   :  { %v1457_v15 = vmul.f32 10000.0, %v1441_v51  ;;  %v1641_v33 = vadd.f32 %v1625_v2, %v1529_v8  ;;  %v1198_v55 = vmul.f32 1.442695, %v1169_v18  ;;  %v1569_v17 = vmul.f32 10000.0, %v1553_v0  ;;  %v4568_v18 = vld [vmem:[%s5043_s2 + $0x4a0] sm:$0xff] }
  0xd8   :  { %v1278_v40 = vmul.f32 1.442695, %v1249_v4  ;;  %v1721_v61 = vadd.f32 %v3262_v41, %v1609_v31  ;;  %v1374_v14 = vmul.f32 1.442695, %v1345_v25  ;;  %v1665_v37 = vsub.f32 %v4380_v6, %v4527_v16 }
  0xd9   :  { %v1486_v56 = vmul.f32 1.442695, %v1457_v15  ;;  %v1753_v60 = vadd.f32 %v1737_v36, %v1641_v33  ;;  %3273 = vpow2.f32 %v1198_v55  ;;  %v1598_v23 = vmul.f32 1.442695, %v1569_v17 }
  0xda   :  { %v3266_v34 = vpop.eup %3265  ;;  %v1777_v27 = vsub.f32 %v4437_v44, %v4527_v16  ;;  %v1833_v52 = vadd.f32 %v3264_v10, %v1721_v61  ;;  %3275 = vpow2.f32 %v1278_v40  ;;  %v1681_v13 = vmul.f32 10000.0, %v1665_v37 }
  0xdb   :  { %v3268_v42 = vpop.eup %3267  ;;  %v1961_v57 = vmul.f32 7.0, %v3266_v34  ;;  %v1865_v48 = vadd.f32 %v1849_v47, %v1753_v60  ;;  %3277 = vpow2.f32 %v1374_v14  ;;  %v5060_v0 = vpack.c.bf16 %v4100_v39, %v4098_v62  ;;  %v4579_v39 = vld [vmem:[%s5043_s2 + $0x360] sm:$0xff] }
  0xdc   :  { %v3270_v22 = vpop.eup %3269  ;;  %v2233_v32 = vmul.f32 %v3268_v42, %v2206_v1  ;;  %v1793_v2 = vmul.f32 10000.0, %v1777_v27  ;;  %v1945_v38 = vadd.f32 %v3266_v34, %v1833_v52  ;;  %3279 = vpow2.f32 %v1486_v56  ;;  %v4556_v1 = vld [vmem:[%s5043_s2 + $0x2e0] sm:$0xff] }
  0xdd   :  { %v3272_v45 = vpop.eup %3271  ;;  %v2073_v6 = vmul.f32 8.0, %v3270_v22  ;;  %v1710_v41 = vmul.f32 1.442695, %v1681_v13  ;;  %v1977_v44 = vadd.f32 %v1961_v57, %v1865_v48  ;;  %3281 = vpow2.f32 %v1598_v23 }
  0xde   :  { %2698 = vmatmul.mubr.f32.vlgmr.msra.gmra.mrb[0].mxu0 %v2233_v32  ;;  %v2185_v35 = vmul.f32 9.0, %v3272_v45  ;;  %v1822_v51 = vmul.f32 1.442695, %v1793_v2  ;;  %v2057_v10 = vadd.f32 %v3270_v22, %v1945_v38  ;;  %v1889_v8 = vsub.f32 %v4459_v24, %v4527_v16 }
  0xdf   :  { %3054 = vmatpush1.bf16.xpose.msra.mxu0 %v5060_v0  ;;  %3283 = vpow2.f32 %v1710_v41  ;;  %v2001_v36 = vsub.f32 %v4478_v7, %v4527_v16  ;;  %v2089_v4 = vadd.f32 %v2073_v6, %v1977_v44  ;;  %v2113_v31 = vsub.f32 %v4506_v59, %v4527_v16 }
  0xe0   :  { %3285 = vpow2.f32 %v1822_v51  ;;  %v1095_v62 = vmax.f32 %v1062_v50, %v4551_v5  ;;  %3056 = vmatprep.subr.bf16.mxu0 %v3055_v30  ;;  %v2169_v24 = vadd.f32 %v3272_v45, %v2057_v10  ;;  %v1905_v7 = vmul.f32 10000.0, %v1889_v8 }
  0xe1   :  { %v2017_v47 = vmul.f32 10000.0, %v2001_v36  ;;  %v1004_v59 = vmax.f32 %v4530_v29, %v4556_v1  ;;  %v2201_v16 = vadd.f32 %v2185_v35, %v2089_v4  ;;  %v2129_v25 = vmul.f32 10000.0, %v2113_v31 }
  0xe2   :  { %v4587_v63 = vmax.f32 %v1095_v62, %v4568_v18  ;;  %3287 = vrcp.f32 %v2169_v24  ;;  %v1934_v50 = vmul.f32 1.442695, %v1905_v7 }
  0xe3   :  { %v2046_v15 = vmul.f32 1.442695, %v2017_v47  ;;  %v4590_v33 = vmax.f32 %v1004_v59, %v4579_v39  ;;  %v3274_v55 = vpop.eup %3273  ;;  %v2158_v26 = vmul.f32 1.442695, %v2129_v25 }
  0xe4   :  { %v1144_v19 = vsub.f32 %v4277_v43, %v4587_v63  ;;  %v1224_v30 = vsub.f32 %v4282_v54, %v4587_v63  ;;  %v1320_v29 = vsub.f32 %v4370_v21, %v4587_v63  ;;  %v3276_v40 = vpop.eup %3275  ;;  %3289 = vpow2.f32 %v1934_v50 }
  0xe5   :  { %v1432_v17 = vsub.f32 %v4390_v3, %v4587_v63  ;;  %v1544_v61 = vsub.f32 %v4447_v53, %v4587_v63  ;;  %v1656_v14 = vsub.f32 %v4473_v49, %v4587_v63  ;;  %v3278_v56 = vpop.eup %3277  ;;  %v1297_v37 = vadd.f32 %v3276_v40, %v3274_v55 }
  0xe6   :  { %3291 = vpow2.f32 %v2046_v15  ;;  %v1160_v43 = vmul.f32 10000.0, %v1144_v19  ;;  %v1240_v34 = vmul.f32 10000.0, %v1224_v30  ;;  %v3280_v54 = vpop.eup %3279  ;;  %v1409_v60 = vmul.f32 2.0, %v3278_v56 }
  0xe7   :  { %3293 = vpow2.f32 %v2158_v26  ;;  %v1336_v21 = vmul.f32 10000.0, %v1320_v29  ;;  %v1448_v23 = vmul.f32 10000.0, %v1432_v17  ;;  %v3282_v27 = vpop.eup %3281  ;;  %v1393_v42 = vadd.f32 %v3278_v56, %v1297_v37  ;;  %v4625_v17 = vld [vmem:[%s5043_s2 + $0xb8] sm:$0xff] }
  0xe8   :  { %v1521_v52 = vmul.f32 3.0, %v3280_v54  ;;  %v1180_v3 = vmul.f32 1.442695, %v1160_v43  ;;  %v1260_v57 = vmul.f32 1.442695, %v1240_v34  ;;  %v1425_v53 = vadd.f32 %v3276_v40, %v1409_v60  ;;  %v4640_v56 = vld [vmem:[%s5043_s2 + $0xf8] sm:$0xff] }
  0xe9   :  { %v3284_v13 = vpop.eup %3283  ;;  %v1633_v22 = vmul.f32 4.0, %v3282_v27  ;;  %v1356_v32 = vmul.f32 1.442695, %v1336_v21  ;;  %v1468_v49 = vmul.f32 1.442695, %v1448_v23  ;;  %v1505_v2 = vadd.f32 %v3280_v54, %v1393_v42  ;;  %v4647_v54 = vld [vmem:[%s5043_s2 + $0x30] sm:$0xff] }
  0xea   :  { %v3286_v48 = vpop.eup %3285  ;;  %v1745_v45 = vmul.f32 5.0, %v3284_v13  ;;  %3295 = vpow2.f32 %v1180_v3  ;;  %v1560_v38 = vmul.f32 10000.0, %v1544_v61  ;;  %v1537_v6 = vadd.f32 %v1521_v52, %v1425_v53  ;;  %v4630_v61 = vld [vmem:[%s5043_s2 + $0x460] sm:$0xff]  ;;  %v4652_v60 = vld [vmem:[%s5043_s2 + $0xb0] sm:$0xff] }
  0xeb   :  { %v1857_v41 = vmul.f32 6.0, %v3286_v48  ;;  %3297 = vpow2.f32 %v1260_v57  ;;  %v1672_v44 = vmul.f32 10000.0, %v1656_v14  ;;  %v1617_v35 = vadd.f32 %v3282_v27, %v1505_v2  ;;  %v4635_v14 = vld [vmem:[%s5043_s2 + $0x78] sm:$0xff]  ;;  %v4657_v52 = vld [vmem:[%s5043_s2 + $0x4e0] sm:$0xff] }
  0xec   :  { %3299 = vpow2.f32 %v1356_v32  ;;  %v1580_v51 = vmul.f32 1.442695, %v1560_v38  ;;  %v1768_v0 = vsub.f32 %v4493_v46, %v4587_v63  ;;  %v3288_v10 = vpop.eup %3287  ;;  %v1649_v8 = vadd.f32 %v1633_v22, %v1537_v6 }
  0xed   :  { %3301 = vpow2.f32 %v1468_v49  ;;  %v1692_v36 = vmul.f32 1.442695, %v1672_v44  ;;  %v1880_v4 = vsub.f32 %v4518_v9, %v4587_v63  ;;  %v2223_v31 = vmul.f32 %v3288_v10, %v2201_v16  ;;  %v4615_v9 = vld [vmem:[%s5043_s2 + $0x3e0] sm:$0xff] }
  0xee   :  { %v1729_v62 = vadd.f32 %v3284_v13, %v1617_v35  ;;  %3303 = vpow2.f32 %v1580_v51  ;;  %v1784_v24 = vmul.f32 10000.0, %v1768_v0  ;;  %v3290_v7 = vpop.eup %3289  ;;  %v1761_v47 = vadd.f32 %v1745_v45, %v1649_v8 }
  0xef   :  { %3305 = vpow2.f32 %v1692_v36  ;;  %v1896_v59 = vmul.f32 10000.0, %v1880_v4  ;;  %v1992_v25 = vsub.f32 %v4551_v5, %v4587_v63  ;;  %2487 = vmatprep.mubr.f32.mxu1 %v2223_v31  ;;  %v1969_v15 = vmul.f32 7.0, %v3290_v7  ;;  %v4620_v5 = vld [vmem:[%s5043_s2 + $0x38] sm:$0xff] }
  0xf0   :  { %v3292_v50 = vpop.eup %3291  ;;  %v1841_v46 = vadd.f32 %v3286_v48, %v1729_v62  ;;  %v1804_v55 = vmul.f32 1.442695, %v1784_v24  ;;  %v2104_v26 = vsub.f32 %v4568_v18, %v4587_v63  ;;  %v1873_v19 = vadd.f32 %v1857_v41, %v1761_v47 }
  0xf1   :  { %v3294_v16 = vpop.eup %3293  ;;  %v2081_v30 = vmul.f32 8.0, %v3292_v50  ;;  %v1916_v29 = vmul.f32 1.442695, %v1896_v59  ;;  %v2008_v40 = vmul.f32 10000.0, %v1992_v25  ;;  %v1070_v34 = vmax.f32 %v4590_v33, %v4615_v9  ;;  %v4662_v33 = vld [vmem:[%s5043_s2 + $0x138] sm:$0xff] }
  0xf2   :  { %v1953_v18 = vadd.f32 %v3290_v7, %v1841_v46  ;;  %3307 = vpow2.f32 %v1804_v55  ;;  %v2120_v63 = vmul.f32 10000.0, %v2104_v26  ;;  %v1985_v37 = vadd.f32 %v1969_v15, %v1873_v19 }
  0xf3   :  { %v2028_v43 = vmul.f32 1.442695, %v2008_v40  ;;  %v2193_v27 = vmul.f32 9.0, %v3294_v16  ;;  %v867_v3 = vmax.f32 %v4620_v5, %v4625_v17  ;;  %3309 = vpow2.f32 %v1916_v29 }
  0xf4   :  { %v3296_v21 = vpop.eup %3295  ;;  %v2065_v23 = vadd.f32 %v3292_v50, %v1953_v18  ;;  %v2140_v42 = vmul.f32 1.442695, %v2120_v63  ;;  %v2097_v13 = vadd.f32 %v2081_v30, %v1985_v37  ;;  %v1103_v53 = vmax.f32 %v1070_v34, %v4630_v61 }
  0xf5   :  { %v3298_v57 = vpop.eup %3297  ;;  %v875_v22 = vmax.f32 %v4635_v14, %v4640_v56  ;;  %3311 = vpow2.f32 %v2028_v43  ;;  %v866_v2 = vmax.f32 %v4647_v54, %v4652_v60  ;;  %v4675_v41 = vmax.f32 %v867_v3, %v4662_v33 }
  0xf6   :  { %v3300_v32 = vpop.eup %3299  ;;  %v2177_v49 = vadd.f32 %v3294_v16, %v2065_v23  ;;  %v1288_v48 = vadd.f32 %v3298_v57, %v3296_v21  ;;  %3313 = vpow2.f32 %v2140_v42  ;;  %v4672_v6 = vmax.f32 %v1103_v53, %v4657_v52 }
  0xf7   :  { %v3302_v45 = vpop.eup %3301  ;;  %v1400_v38 = vmul.f32 2.0, %v3300_v32  ;;  %v2209_v35 = vadd.f32 %v2193_v27, %v2097_v13 }
  0xf8   :  { %v3304_v44 = vpop.eup %3303  ;;  %3315 = vrcp.f32 %v2177_v49  ;;  %v1384_v51 = vadd.f32 %v3300_v32, %v1288_v48  ;;  %v1512_v0 = vmul.f32 3.0, %v3302_v45  ;;  %v1152_v4 = vsub.f32 %v4395_v20, %v4672_v6  ;;  %v4690_v20 = vld [vmem:[%s5043_s2 + $0x178] sm:$0xff] }
  0xf9   :  { %v3306_v10 = vpop.eup %3305  ;;  %v1416_v8 = vadd.f32 %v3298_v57, %v1400_v38  ;;  %v1624_v36 = vmul.f32 4.0, %v3304_v44  ;;  %v1232_v31 = vsub.f32 %v4400_v58, %v4672_v6  ;;  %v1328_v7 = vsub.f32 %v4464_v28, %v4672_v6 }
  0xfa   :  { %v1496_v62 = vadd.f32 %v3302_v45, %v1384_v51  ;;  %v1736_v24 = vmul.f32 5.0, %v3306_v10  ;;  %v1440_v47 = vsub.f32 %v4487_v11, %v4672_v6  ;;  %v1168_v25 = vmul.f32 10000.0, %v1152_v4  ;;  %v4707_v45 = vld [vmem:[%s5043_s2 + $0x238] sm:$0xff] }
  0xfb   :  { %v1528_v59 = vadd.f32 %v1512_v0, %v1416_v8  ;;  %v1248_v50 = vmul.f32 10000.0, %v1232_v31  ;;  %v1552_v46 = vsub.f32 %v4512_v12, %v4672_v6  ;;  %v1344_v55 = vmul.f32 10000.0, %v1328_v7  ;;  %v4697_v12 = vld [vmem:[%s5043_s2 + $0x1b8] sm:$0xff] }
  0xfc   :  { %v3308_v58 = vpop.eup %3307  ;;  %v1608_v15 = vadd.f32 %v3304_v44, %v1496_v62  ;;  %v1456_v26 = vmul.f32 10000.0, %v1440_v47  ;;  %v1664_v28 = vsub.f32 %v4556_v1, %v4672_v6  ;;  %v1196_v19 = vmul.f32 1.442695, %v1168_v25  ;;  %v4729_v31 = vld [vmem:[%s5043_s2 + $0x278] sm:$0xff]  ;;  %v4750_v47 = vld [vmem:[%s5043_s2 + $0xf0] sm:$0xff] }
  0xfd   :  { %v1640_v16 = vadd.f32 %v1624_v36, %v1528_v59  ;;  %v1848_v11 = vmul.f32 6.0, %v3308_v58  ;;  %v1276_v30 = vmul.f32 1.442695, %v1248_v50  ;;  %v1372_v40 = vmul.f32 1.442695, %v1344_v55  ;;  %v3310_v37 = vpop.eup %3309  ;;  %v4739_v7 = vld [vmem:[%s5043_s2 + $0x338] sm:$0xff] }
  0xfe   :  { %v1720_v29 = vadd.f32 %v3306_v10, %v1608_v15  ;;  %v1484_v18 = vmul.f32 1.442695, %v1456_v26  ;;  %v908_v63 = vmax.f32 %v875_v22, %v4690_v20  ;;  %3317 = vpow2.f32 %v1196_v19  ;;  %v4761_v15 = vld [vmem:[%s5043_s2 + $0x1b0] sm:$0xff]  ;;  %v4766_v26 = vld [vmem:[%s5043_s2 + $0x3b8] sm:$0xff] }
  0xff   :  { %v1752_v43 = vadd.f32 %v1736_v24, %v1640_v16  ;;  %v1568_v34 = vmul.f32 10000.0, %v1552_v46  ;;  %v1680_v21 = vmul.f32 10000.0, %v1664_v28  ;;  %v3312_v1 = vpop.eup %3311  ;;  %v1960_v27 = vmul.f32 7.0, %v3310_v37 }
 0x100   :  { %v1832_v23 = vadd.f32 %v3308_v58, %v1720_v29  ;;  %3319 = vpow2.f32 %v1276_v30  ;;  %v1776_v42 = vsub.f32 %v4579_v39, %v4672_v6  ;;  %v3314_v3 = vpop.eup %3313  ;;  %v933_v53 = vmax.f32 %v4675_v41, %v4697_v12  ;;  %v4714_v41 = vld [vmem:[%s5043_s2 + $0x1f8] sm:$0xff] }
 0x101   :  { %v1864_v57 = vadd.f32 %v1848_v11, %v1752_v43  ;;  %3321 = vpow2.f32 %v1372_v40  ;;  %v1596_v13 = vmul.f32 1.442695, %v1568_v34  ;;  %v1708_v49 = vmul.f32 1.442695, %v1680_v21  ;;  %v4756_v58 = vld [vmem:[%s5043_s2 + $0x2f8] sm:$0xff]  ;;  %v4776_v11 = vld [vmem:[%s5043_s2 + $0x170] sm:$0xff] }
 0x102   :  { %v3316_v22 = vpop.eup %3315  ;;  %v1944_v32 = vadd.f32 %v3310_v37, %v1832_v23  ;;  %3323 = vpow2.f32 %v1484_v18  ;;  %v1792_v48 = vmul.f32 10000.0, %v1776_v42  ;;  %v2072_v44 = vmul.f32 8.0, %v3312_v1  ;;  %v4782_v40 = vld [vmem:[%s5043_s2 + $0x378] sm:$0xff]  ;;  %v4787_v18 = vld [vmem:[%s5043_s2 + $0x230] sm:$0xff] }
 0x103   :  { %v2239_v38 = vmul.f32 %v3316_v22, %v2209_v35  ;;  %3325 = vpow2.f32 %v1596_v13  ;;  %v1888_v39 = vsub.f32 %v4615_v9, %v4672_v6  ;;  %v1976_v51 = vadd.f32 %v1960_v27, %v1864_v57  ;;  %v4721_v35 = vld [vmem:[%s5043_s2 + $0x2b8] sm:$0xff]  ;;  %v4791_v43 = vld [vmem:[#allocation2 + $0x30] sm:$0xff] }
 0x104   :  { %v2056_v0 = vadd.f32 %v3312_v1, %v1944_v32  ;;  %v1820_v10 = vmul.f32 1.442695, %v1792_v48  ;;  %v2000_v8 = vsub.f32 %v4630_v61, %v4672_v6  ;;  %3327 = vpow2.f32 %v1708_v49  ;;  %v4734_v61 = vld [vmem:[%s5043_s2 + $0x130] sm:$0xff]  ;;  %v4798_v21 = vld [vmem:[%s5043_s2 + $0x438] sm:$0xff] }
 0x105   :  { %2767 = vmatprep.mubr.f32.mxu0 %v2239_v38  ;;  %v1904_v36 = vmul.f32 10000.0, %v1888_v39  ;;  %v2112_v9 = vsub.f32 %v4657_v52, %v4672_v6  ;;  %v966_v4 = vmax.f32 %v933_v53, %v4707_v45  ;;  %v941_v52 = vmax.f32 %v908_v63, %v4714_v41  ;;  %v4745_v6 = vld [vmem:[%s5043_s2 + $0x70] sm:$0xff]  ;;  %v4806_v57 = vld [vmem:[%s5043_s2 + $0x3f8] sm:$0xff] }
 0x106   :  { %v2168_v62 = vadd.f32 %v3314_v3, %v2056_v0  ;;  %3329 = vpow2.f32 %v1820_v10  ;;  %v2016_v24 = vmul.f32 10000.0, %v2000_v8  ;;  %v2184_v59 = vmul.f32 9.0, %v3314_v3  ;;  %v4793_v34 = vld [vmem:[#allocation2 + $0xb0] sm:$0x3]  ;;  %v4819_v49 = vld [vmem:[%s5043_s2 + $0x4b8] sm:$0xff] }
 0x107   :  { %v1932_v25 = vmul.f32 1.442695, %v1904_v36  ;;  %v2128_v50 = vmul.f32 10000.0, %v2112_v9  ;;  %v999_v46 = vmax.f32 %v966_v4, %v4721_v35  ;;  %v974_v28 = vmax.f32 %v941_v52, %v4729_v31  ;;  %v4811_v13 = vld [vmem:[%s5043_s2 + $0x2b0] sm:$0xff]  ;;  %v4834_v36 = vld [vmem:[%s5043_s2 + $0x478] sm:$0xff] }
 0x108   :  { %3331 = vrcp.f32 %v2168_v62  ;;  %v2044_v55 = vmul.f32 1.442695, %v2016_v24  ;;  %v899_v16 = vmax.f32 %v866_v2, %v4734_v61  ;;  %v3318_v19 = vpop.eup %3317  ;;  %v874_v2 = vmax.f32 %v4745_v6, %v4750_v47  ;;  %v4839_v9 = vld [vmem:[%s5043_s2 + $0x330] sm:$0xff] }
 0x109   :  { %3333 = vpow2.f32 %v1932_v25  ;;  %v2156_v30 = vmul.f32 1.442695, %v2128_v50  ;;  %v1032_v29 = vmax.f32 %v999_v46, %v4739_v7  ;;  %v2088_v37 = vadd.f32 %v2072_v44, %v1976_v51  ;;  %v4826_v44 = vld [vmem:[%s5043_s2 + $0x1f0] sm:$0xff] }
 0x10a   :  { %v3320_v63 = vpop.eup %3319  ;;  %3335 = vpow2.f32 %v2044_v55  ;;  %v1007_v1 = vmax.f32 %v974_v28, %v4756_v58  ;;  %v932_v23 = vmax.f32 %v899_v16, %v4761_v15  ;;  %v4814_v53 = vmax.f32 %v874_v2, %v4776_v11 }
 0x10b   :  { %v3322_v27 = vpop.eup %3321  ;;  %v1296_v42 = vadd.f32 %v3320_v63, %v3318_v19  ;;  %3337 = vpow2.f32 %v2156_v30  ;;  %v1065_v3 = vmax.f32 %v1032_v29, %v4766_v26  ;;  %v3041_v51 = vpack.c.bf16 %v4793_v34, %v4791_v43 }
 0x10c   :  { %v3324_v22 = vpop.eup %3323  ;;  %v1408_v32 = vmul.f32 2.0, %v3322_v27  ;;  %v1040_v48 = vmax.f32 %v1007_v1, %v4782_v40  ;;  %v965_v38 = vmax.f32 %v932_v23, %v4787_v18  ;;  %v2200_v50 = vadd.f32 %v2184_v59, %v2088_v37 }
 0x10d   :  { %v3326_v39 = vpop.eup %3325  ;;  %v1392_v0 = vadd.f32 %v3322_v27, %v1296_v42  ;;  %v1520_v10 = vmul.f32 3.0, %v3324_v22  ;;  %v1098_v8 = vmax.f32 %v1065_v3, %v4798_v21  ;;  %v940_v28 = vmax.f32 %v4814_v53, %v4826_v44 }
 0x10e   :  { %v1424_v4 = vadd.f32 %v3320_v63, %v1408_v32  ;;  %v1632_v62 = vmul.f32 4.0, %v3326_v39  ;;  %v1073_v24 = vmax.f32 %v1040_v48, %v4806_v57  ;;  %v998_v52 = vmax.f32 %v965_v38, %v4811_v13  ;;  %v3328_v25 = vpop.eup %3327 }
 0x10f   :  { %v1504_v46 = vadd.f32 %v3324_v22, %v1392_v0  ;;  %v4844_v55 = vmax.f32 %v1098_v8, %v4819_v49  ;;  %v1744_v30 = vmul.f32 5.0, %v3328_v25 }
 0x110   :  { %v3330_v16 = vpop.eup %3329  ;;  %v1536_v19 = vadd.f32 %v1520_v10, %v1424_v4  ;;  %v4849_v29 = vmax.f32 %v1073_v24, %v4834_v36  ;;  %v4852_v2 = vmax.f32 %v998_v52, %v4839_v9 }
 0x111   :  { %v1616_v63 = vadd.f32 %v3326_v39, %v1504_v46  ;;  %v1856_v43 = vmul.f32 6.0, %v3330_v16  ;;  %v1147_v59 = vsub.f32 %v4620_v5, %v4844_v55  ;;  %v1227_v37 = vsub.f32 %v4625_v17, %v4844_v55 }
 0x112   :  { %v3332_v34 = vpop.eup %3331  ;;  %v1648_v1 = vadd.f32 %v1632_v62, %v1536_v19  ;;  %v1323_v23 = vsub.f32 %v4662_v33, %v4844_v55  ;;  %v1435_v27 = vsub.f32 %v4697_v12, %v4844_v55  ;;  %v1547_v42 = vsub.f32 %v4707_v45, %v4844_v55 }
 0x113   :  { %v3334_v3 = vpop.eup %3333  ;;  %v2221_v22 = vmul.f32 %v3332_v34, %v2200_v50  ;;  %v1728_v32 = vadd.f32 %v3328_v25, %v1616_v63  ;;  %v1163_v48 = vmul.f32 10000.0, %v1147_v59  ;;  %v1243_v38 = vmul.f32 10000.0, %v1227_v37 }
 0x114   :  { %v3336_v5 = vpop.eup %3335  ;;  %v1760_v39 = vadd.f32 %v1744_v30, %v1648_v1  ;;  %v1968_v0 = vmul.f32 7.0, %v3334_v3  ;;  %v1339_v17 = vmul.f32 10000.0, %v1323_v23  ;;  %v1451_v10 = vmul.f32 10000.0, %v1435_v27  ;;  %v4877_v27 = vld [vmem:[%s5043_s2 + $0x4f8] sm:$0xff] }
 0x115   :  { %v3338_v8 = vpop.eup %3337  ;;  %2488 = vmatmul.mubr.f32.vlgmr.msra.gmra.mrb[0].mxu1 %v2221_v22  ;;  %v1840_v4 = vadd.f32 %v3330_v16, %v1728_v32  ;;  %v2080_v33 = vmul.f32 8.0, %v3336_v5  ;;  %v1186_v62 = vmul.f32 1.442695, %v1163_v48  ;;  %v1266_v24 = vmul.f32 1.442695, %v1243_v38  ;;  %v4889_v22 = vld [vmem:[%s5043_s2 + $0x3b0] sm:$0xff] }
 0x116   :  { %3042 = vmatpush1.bf16.xpose.msra.mxu1 %v3041_v51  ;;  %v1872_v12 = vadd.f32 %v1856_v43, %v1760_v39  ;;  %v2192_v52 = vmul.f32 9.0, %v3338_v8  ;;  %v1362_v45 = vmul.f32 1.442695, %v1339_v17  ;;  %v1474_v46 = vmul.f32 1.442695, %v1451_v10  ;;  %v4870_v51 = vld [vmem:[#allocation2 + $0x70] sm:$0xff] }
 0x117   :  { %v1952_v50 = vadd.f32 %v3334_v3, %v1840_v4  ;;  %3339 = vpow2.f32 %v1186_v62  ;;  %v1563_v25 = vmul.f32 10000.0, %v1547_v42  ;;  %v1659_v19 = vsub.f32 %v4721_v35, %v4844_v55  ;;  %v4872_v43 = vld [vmem:[#allocation2 + $0xf0] sm:$0x3] }
 0x118   :  { %v1984_v30 = vadd.f32 %v1968_v0, %v1872_v12  ;;  %3341 = vpow2.f32 %v1266_v24  ;;  %v1771_v63 = vsub.f32 %v4739_v7, %v4844_v55  ;;  %v1883_v16 = vsub.f32 %v4766_v26, %v4844_v55  ;;  %v4882_v7 = vld [vmem:[%s5043_s2 + $0x270] sm:$0xff] }
 0x119   :  { %v2064_v59 = vadd.f32 %v3336_v5, %v1952_v50  ;;  %3343 = vpow2.f32 %v1362_v45  ;;  %v1586_v37 = vmul.f32 1.442695, %v1563_v25  ;;  %v1675_v34 = vmul.f32 10000.0, %v1659_v19 }
 0x11a   :  { %v2096_v1 = vadd.f32 %v2080_v33, %v1984_v30  ;;  %3345 = vpow2.f32 %v1474_v46  ;;  %v1787_v23 = vmul.f32 10000.0, %v1771_v63  ;;  %v1899_v35 = vmul.f32 10000.0, %v1883_v16 }
 0x11b   :  { %v2176_v26 = vadd.f32 %v3338_v8, %v2064_v59  ;;  %3347 = vpow2.f32 %v1586_v37  ;;  %v1698_v42 = vmul.f32 1.442695, %v1675_v34  ;;  %v1995_v3 = vsub.f32 %v4798_v21, %v4844_v55 }
 0x11c   :  { %v3057_v32 = vpack.c.bf16 %v4872_v43, %v4870_v51  ;;  %v1810_v48 = vmul.f32 1.442695, %v1787_v23  ;;  %v1922_v38 = vmul.f32 1.442695, %v1899_v35  ;;  %v2107_v5 = vsub.f32 %v4819_v49, %v4844_v55  ;;  %v4945_v51 = vld [vmem:[%s5043_s2 + $0x370] sm:$0xff] }
 0x11d   :  { %3349 = vrcp.f32 %v2176_v26  ;;  %v2011_v39 = vmul.f32 10000.0, %v1995_v3  ;;  %v4897_v0 = vmax.f32 %v4849_v29, %v4877_v27  ;;  %v4903_v21 = vmax.f32 %v940_v28, %v4882_v7 }
 0x11e   :  { %v2208_v17 = vadd.f32 %v2192_v52, %v2096_v1  ;;  %3351 = vpow2.f32 %v1698_v42  ;;  %v2123_v10 = vmul.f32 10000.0, %v2107_v5  ;;  %v1064_v8 = vmax.f32 %v4852_v2, %v4889_v22 }
 0x11f   :  { %3353 = vpow2.f32 %v1810_v48  ;;  %v2034_v49 = vmul.f32 1.442695, %v2011_v39  ;;  %v1155_v55 = vsub.f32 %v4635_v14, %v4897_v0  ;;  %v1235_v29 = vsub.f32 %v4640_v56, %v4897_v0 }
 0x120   :  { %3355 = vpow2.f32 %v1922_v38  ;;  %v2146_v4 = vmul.f32 1.442695, %v2123_v10  ;;  %v1331_v53 = vsub.f32 %v4690_v20, %v4897_v0  ;;  %v1443_v28 = vsub.f32 %v4714_v41, %v4897_v0 }
 0x121   :  { %v3340_v33 = vpop.eup %3339  ;;  %3357 = vpow2.f32 %v2034_v49  ;;  %v1171_v62 = vmul.f32 10000.0, %v1155_v55  ;;  %v1251_v24 = vmul.f32 10000.0, %v1235_v29  ;;  %v1555_v12 = vsub.f32 %v4729_v31, %v4897_v0  ;;  %v4928_v49 = vld [vmem:[%s5043_s2 + $0x2f0] sm:$0xff] }
 0x122   :  { %v3342_v52 = vpop.eup %3341  ;;  %3359 = vpow2.f32 %v2146_v4  ;;  %v1347_v14 = vmul.f32 10000.0, %v1331_v53  ;;  %v1459_v45 = vmul.f32 10000.0, %v1443_v28  ;;  %v1667_v56 = vsub.f32 %v4756_v58, %v4897_v0 }
 0x123   :  { %v3344_v46 = vpop.eup %3343  ;;  %v1291_v50 = vadd.f32 %v3342_v52, %v3340_v33  ;;  %v1202_v20 = vmul.f32 1.442695, %v1171_v62  ;;  %v1282_v25 = vmul.f32 1.442695, %v1251_v24  ;;  %v1571_v19 = vmul.f32 10000.0, %v1555_v12  ;;  %v4936_v12 = vld [vmem:[%s5043_s2 + $0x430] sm:$0xff] }
 0x124   :  { %v3346_v41 = vpop.eup %3345  ;;  %v1403_v30 = vmul.f32 2.0, %v3344_v46  ;;  %v1378_v63 = vmul.f32 1.442695, %v1347_v14  ;;  %v1490_v16 = vmul.f32 1.442695, %v1459_v45  ;;  %v1683_v59 = vmul.f32 10000.0, %v1667_v56 }
 0x125   :  { %v3348_v37 = vpop.eup %3347  ;;  %v1387_v34 = vadd.f32 %v3344_v46, %v1291_v50  ;;  %v1515_v31 = vmul.f32 3.0, %v3346_v41  ;;  %3361 = vpow2.f32 %v1202_v20  ;;  %v1602_v1 = vmul.f32 1.442695, %v1571_v19 }
 0x126   :  { %v1419_v23 = vadd.f32 %v3342_v52, %v1403_v30  ;;  %v1627_v35 = vmul.f32 4.0, %v3348_v37  ;;  %3363 = vpow2.f32 %v1282_v25  ;;  %v1714_v26 = vmul.f32 1.442695, %v1683_v59 }
 0x127   :  { %v3350_v58 = vpop.eup %3349  ;;  %v1499_v42 = vadd.f32 %v3346_v41, %v1387_v34  ;;  %3365 = vpow2.f32 %v1378_v63  ;;  %v1779_v3 = vsub.f32 %v4782_v40, %v4897_v0  ;;  %v1891_v48 = vsub.f32 %v4806_v57, %v4897_v0 }
 0x128   :  { %v3352_v38 = vpop.eup %3351  ;;  %v2237_v5 = vmul.f32 %v3350_v58, %v2208_v17  ;;  %v1531_v39 = vadd.f32 %v1515_v31, %v1419_v23  ;;  %3367 = vpow2.f32 %v1490_v16  ;;  %v2003_v10 = vsub.f32 %v4834_v36, %v4897_v0 }
 0x129   :  { %v3354_v55 = vpop.eup %3353  ;;  %v1611_v29 = vadd.f32 %v3348_v37, %v1499_v42  ;;  %v1739_v4 = vmul.f32 5.0, %v3352_v38  ;;  %3369 = vpow2.f32 %v1602_v1  ;;  %v1795_v40 = vmul.f32 10000.0, %v1779_v3 }
 0x12a   :  { %v3356_v53 = vpop.eup %3355  ;;  %2768 = vmatmul.mubr.f32.vlgmr.msra.gmra.mrb[0].mxu0 %v2237_v5  ;;  %v1643_v57 = vadd.f32 %v1627_v35, %v1531_v39  ;;  %v1851_v28 = vmul.f32 6.0, %v3354_v55  ;;  %3371 = vpow2.f32 %v1714_v26  ;;  %v1907_v17 = vmul.f32 10000.0, %v1891_v48 }
 0x12b   :  { %v3358_v33 = vpop.eup %3357  ;;  %3058 = vmatpush1.bf16.xpose.msra.mxu0 %v3057_v32  ;;  %v1723_v36 = vadd.f32 %v3352_v38, %v1611_v29  ;;  %v1826_v62 = vmul.f32 1.442695, %v1795_v40  ;;  %v2019_v24 = vmul.f32 10000.0, %v2003_v10  ;;  %v1006_v52 = vmax.f32 %v4903_v21, %v4928_v49  ;;  %v4950_v21 = vld [vmem:[%s5043_s2 + $0x4b0] sm:$0xff] }
 0x12c   :  { %v3360_v14 = vpop.eup %3359  ;;  %v1755_v45 = vadd.f32 %v1739_v4, %v1643_v57  ;;  %v1963_v56 = vmul.f32 7.0, %v3356_v53  ;;  %v1938_v46 = vmul.f32 1.442695, %v1907_v17  ;;  %v2115_v50 = vsub.f32 %v4877_v27, %v4897_v0  ;;  %v4959_v0 = vld [vmem:[%s5043_s2 + $0x3f0] sm:$0xff] }
 0x12d   :  { %v1835_v43 = vadd.f32 %v3354_v55, %v1723_v36  ;;  %v2075_v32 = vmul.f32 8.0, %v3358_v33  ;;  %3373 = vpow2.f32 %v1826_v62  ;;  %v2050_v20 = vmul.f32 1.442695, %v2019_v24 }
 0x12e   :  { %v1867_v25 = vadd.f32 %v1851_v28, %v1755_v45  ;;  %3375 = vpow2.f32 %v1938_v46  ;;  %v2131_v19 = vmul.f32 10000.0, %v2115_v50  ;;  %v1097_v27 = vmax.f32 %v1064_v8, %v4936_v12 }
 0x12f   :  { %v3362_v41 = vpop.eup %3361  ;;  %v1947_v30 = vadd.f32 %v3356_v53, %v1835_v43  ;;  %3377 = vpow2.f32 %v2050_v20  ;;  %v4962_v63 = vmax.f32 %v1006_v52, %v4945_v51  ;;  %v2187_v37 = vmul.f32 9.0, %v3360_v14 }
 0x130   :  { %v3364_v16 = vpop.eup %3363  ;;  %v1979_v59 = vadd.f32 %v1963_v56, %v1867_v25  ;;  %v2162_v34 = vmul.f32 1.442695, %v2131_v19  ;;  %v4965_v31 = vmax.f32 %v1097_v27, %v4950_v21 }
 0x131   :  { %v3366_v2 = vpop.eup %3365  ;;  %v2059_v8 = vadd.f32 %v3358_v33, %v1947_v30  ;;  %v1299_v1 = vadd.f32 %v3364_v16, %v3362_v41  ;;  %v1072_v23 = vmax.f32 %v4962_v63, %v4959_v0 }
 0x132   :  { %v3368_v35 = vpop.eup %3367  ;;  %v2091_v26 = vadd.f32 %v2075_v32, %v1979_v59  ;;  %v1411_v58 = vmul.f32 2.0, %v3366_v2  ;;  %3379 = vpow2.f32 %v2162_v34  ;;  %v1146_v42 = vsub.f32 %v4647_v54, %v4965_v31 }
 0x133   :  { %v3370_v3 = vpop.eup %3369  ;;  %v2171_v48 = vadd.f32 %v3360_v14, %v2059_v8  ;;  %v1395_v38 = vadd.f32 %v3366_v2, %v1299_v1  ;;  %v1523_v5 = vmul.f32 3.0, %v3368_v35  ;;  %v1226_v39 = vsub.f32 %v4652_v60, %v4965_v31 }
 0x134   :  { %v3372_v10 = vpop.eup %3371  ;;  %v2203_v55 = vadd.f32 %v2187_v37, %v2091_v26  ;;  %v1427_v29 = vadd.f32 %v3364_v16, %v1411_v58  ;;  %v1635_v4 = vmul.f32 4.0, %v3370_v3  ;;  %v1162_v40 = vmul.f32 10000.0, %v1146_v42  ;;  %v4988_v42 = vld [vmem:[%s5043_s2 + $0x470] sm:$0xff] }
 0x135   :  { %3381 = vrcp.f32 %v2171_v48  ;;  %v1507_v53 = vadd.f32 %v3368_v35, %v1395_v38  ;;  %v1747_v57 = vmul.f32 5.0, %v3372_v10  ;;  %v1242_v28 = vmul.f32 10000.0, %v1226_v39 }
 0x136   :  { %v1539_v17 = vadd.f32 %v1523_v5, %v1427_v29  ;;  %v1184_v33 = vmul.f32 1.442695, %v1162_v40  ;;  %v1322_v54 = vsub.f32 %v4734_v61, %v4965_v31  ;;  %v1434_v36 = vsub.f32 %v4761_v15, %v4965_v31  ;;  %v4997_v29 = vld [vmem:[%s5043_s2 + $0x4f0] sm:$0xff] }
 0x137   :  { %v3374_v62 = vpop.eup %3373  ;;  %v1619_v24 = vadd.f32 %v3370_v3, %v1507_v53  ;;  %v1264_v60 = vmul.f32 1.442695, %v1242_v28  ;;  %v1546_v52 = vsub.f32 %v4787_v18, %v4965_v31  ;;  %v1658_v14 = vsub.f32 %v4811_v13, %v4965_v31 }
 0x138   :  { %v3376_v45 = vpop.eup %3375  ;;  %v1651_v56 = vadd.f32 %v1635_v4, %v1539_v17  ;;  %v1859_v46 = vmul.f32 6.0, %v3374_v62  ;;  %3383 = vpow2.f32 %v1184_v33  ;;  %v1338_v50 = vmul.f32 10000.0, %v1322_v54 }
 0x139   :  { %v3378_v43 = vpop.eup %3377  ;;  %v1731_v32 = vadd.f32 %v3372_v10, %v1619_v24  ;;  %v1971_v61 = vmul.f32 7.0, %v3376_v45  ;;  %3385 = vpow2.f32 %v1264_v60  ;;  %v1450_v20 = vmul.f32 10000.0, %v1434_v36 }
 0x13a   :  { %v1763_v15 = vadd.f32 %v1747_v57, %v1651_v56  ;;  %v2083_v25 = vmul.f32 8.0, %v3378_v43  ;;  %v1360_v19 = vmul.f32 1.442695, %v1338_v50  ;;  %v1562_v27 = vmul.f32 10000.0, %v1546_v52 }
 0x13b   :  { %v1843_v41 = vadd.f32 %v3374_v62, %v1731_v32  ;;  %v1472_v30 = vmul.f32 1.442695, %v1450_v20  ;;  %v1674_v18 = vmul.f32 10000.0, %v1658_v14  ;;  %v1770_v13 = vsub.f32 %v4839_v9, %v4965_v31 }
 0x13c   :  { %v3380_v16 = vpop.eup %3379  ;;  %v1875_v59 = vadd.f32 %v1859_v46, %v1763_v15  ;;  %3387 = vpow2.f32 %v1360_v19  ;;  %v1584_v37 = vmul.f32 1.442695, %v1562_v27  ;;  %v1882_v34 = vsub.f32 %v4889_v22, %v4965_v31 }
 0x13d   :  { %v1955_v2 = vadd.f32 %v3376_v45, %v1843_v41  ;;  %v2195_v8 = vmul.f32 9.0, %v3380_v16  ;;  %3389 = vpow2.f32 %v1472_v30  ;;  %v1696_v1 = vmul.f32 1.442695, %v1674_v18 }
 0x13e   :  { %v1987_v35 = vadd.f32 %v1971_v61, %v1875_v59  ;;  %3391 = vpow2.f32 %v1584_v37  ;;  %v1786_v26 = vmul.f32 10000.0, %v1770_v13  ;;  %v1898_v58 = vmul.f32 10000.0, %v1882_v34 }
 0x13f   :  { %v3382_v9 = vpop.eup %3381  ;;  %v2067_v3 = vadd.f32 %v3378_v43, %v1955_v2  ;;  %3393 = vpow2.f32 %v1696_v1  ;;  %v1994_v48 = vsub.f32 %v4936_v12, %v4965_v31  ;;  %v2106_v22 = vsub.f32 %v4950_v21, %v4965_v31 }
 0x140   :  { %v2227_v38 = vmul.f32 %v3382_v9, %v2203_v55  ;;  %v2099_v5 = vadd.f32 %v2083_v25, %v1987_v35  ;;  %v1808_v39 = vmul.f32 1.442695, %v1786_v26  ;;  %v1920_v10 = vmul.f32 1.442695, %v1898_v58 }
 0x141   :  { %v2179_v4 = vadd.f32 %v3380_v16, %v2067_v3  ;;  %v2010_v40 = vmul.f32 10000.0, %v1994_v48  ;;  %v2122_v53 = vmul.f32 10000.0, %v2106_v22  ;;  %v1105_v12 = vmax.f32 %v1072_v23, %v4988_v42 }
 0x142   :  { %v3384_v57 = vpop.eup %3383  ;;  %2557 = vmatprep.mubr.f32.mxu1 %v2227_v38  ;;  %3395 = vpow2.f32 %v1808_v39  ;;  %v2211_v17 = vadd.f32 %v2195_v8, %v2099_v5 }
 0x143   :  { %v3386_v21 = vpop.eup %3385  ;;  %3397 = vrcp.f32 %v2179_v4  ;;  %v2032_v31 = vmul.f32 1.442695, %v2010_v40  ;;  %v2144_v55 = vmul.f32 1.442695, %v2122_v53  ;;  %v5004_v28 = vmax.f32 %v1105_v12, %v4997_v29 }
 0x144   :  { %v1290_v33 = vadd.f32 %v3386_v21, %v3384_v57  ;;  %3399 = vpow2.f32 %v1920_v10 }
 0x145   :  { %3401 = vpow2.f32 %v2032_v31  ;;  %v1154_v54 = vsub.f32 %v4745_v6, %v5004_v28  ;;  %v1234_v63 = vsub.f32 %v4750_v47, %v5004_v28  ;;  %v1330_v23 = vsub.f32 %v4776_v11, %v5004_v28 }
 0x146   :  { %v3388_v36 = vpop.eup %3387  ;;  %3403 = vpow2.f32 %v2144_v55  ;;  %v1442_v62 = vsub.f32 %v4826_v44, %v5004_v28  ;;  %v1554_v24 = vsub.f32 %v4882_v7, %v5004_v28  ;;  %v1666_v60 = vsub.f32 %v4928_v49, %v5004_v28 }
 0x147   :  { %v3390_v52 = vpop.eup %3389  ;;  %v1386_v14 = vadd.f32 %v3388_v36, %v1290_v33  ;;  %v1402_v6 = vmul.f32 2.0, %v3388_v36  ;;  %v1170_v45 = vmul.f32 10000.0, %v1154_v54  ;;  %v1250_v56 = vmul.f32 10000.0, %v1234_v63 }
 0x148   :  { %v3392_v47 = vpop.eup %3391  ;;  %v1514_v46 = vmul.f32 3.0, %v3390_v52  ;;  %v1346_v50 = vmul.f32 10000.0, %v1330_v23  ;;  %v1458_v11 = vmul.f32 10000.0, %v1442_v62  ;;  %v1570_v43 = vmul.f32 10000.0, %v1554_v24 }
 0x149   :  { %v3394_v32 = vpop.eup %3393  ;;  %v1418_v61 = vadd.f32 %v3386_v21, %v1402_v6  ;;  %v1498_v20 = vadd.f32 %v3390_v52, %v1386_v14  ;;  %v1626_v44 = vmul.f32 4.0, %v3392_v47  ;;  %v1200_v15 = vmul.f32 1.442695, %v1170_v45 }
 0x14a   :  { %v1738_v25 = vmul.f32 5.0, %v3394_v32  ;;  %v1280_v7 = vmul.f32 1.442695, %v1250_v56  ;;  %v1376_v19 = vmul.f32 1.442695, %v1346_v50  ;;  %v1682_v27 = vmul.f32 10000.0, %v1666_v60 }
 0x14b   :  { %v1530_v49 = vadd.f32 %v1514_v46, %v1418_v61  ;;  %v1610_v41 = vadd.f32 %v3392_v47, %v1498_v20  ;;  %3405 = vpow2.f32 %v1200_v15  ;;  %v1488_v30 = vmul.f32 1.442695, %v1458_v11 }
 0x14c   :  { %v3396_v18 = vpop.eup %3395  ;;  %3407 = vpow2.f32 %v1280_v7  ;;  %v1600_v13 = vmul.f32 1.442695, %v1570_v43  ;;  %v1712_v16 = vmul.f32 1.442695, %v1682_v27  ;;  %v1778_v59 = vsub.f32 %v4945_v51, %v5004_v28 }
 0x14d   :  { %v3398_v37 = vpop.eup %3397  ;;  %v1642_v34 = vadd.f32 %v1626_v44, %v1530_v49  ;;  %v1722_v2 = vadd.f32 %v3394_v32, %v1610_v41  ;;  %v1850_v8 = vmul.f32 6.0, %v3396_v18  ;;  %3409 = vpow2.f32 %v1376_v19 }
 0x14e   :  { %v3400_v1 = vpop.eup %3399  ;;  %v2243_v35 = vmul.f32 %v3398_v37, %v2211_v17  ;;  %3411 = vpow2.f32 %v1488_v30  ;;  %v1794_v26 = vmul.f32 10000.0, %v1778_v59  ;;  %v1890_v58 = vsub.f32 %v4959_v0, %v5004_v28 }
 0x14f   :  { %v3402_v9 = vpop.eup %3401  ;;  %v1754_v3 = vadd.f32 %v1738_v25, %v1642_v34  ;;  %v1834_v48 = vadd.f32 %v3396_v18, %v1722_v2  ;;  %3413 = vpow2.f32 %v1600_v13  ;;  %v2002_v39 = vsub.f32 %v4988_v42, %v5004_v28 }
 0x150   :  { %v3404_v22 = vpop.eup %3403  ;;  %2837 = vmatprep.mubr.f32.mxu0 %v2243_v35  ;;  %v1824_v38 = vmul.f32 1.442695, %v1794_v26  ;;  %v1906_v51 = vmul.f32 10000.0, %v1890_v58  ;;  %3415 = vpow2.f32 %v1712_v16  ;;  %v1962_v4 = vmul.f32 7.0, %v3400_v1 }
 0x151   :  { %v1946_v5 = vadd.f32 %v3400_v1, %v1834_v48  ;;  %v1866_v10 = vadd.f32 %v1850_v8, %v1754_v3  ;;  %v2114_v53 = vsub.f32 %v4997_v29, %v5004_v28  ;;  %v2018_v12 = vmul.f32 10000.0, %v2002_v39 }
 0x152   :  { %v1936_v40 = vmul.f32 1.442695, %v1906_v51  ;;  %3417 = vpow2.f32 %v1824_v38  ;;  %v2074_v54 = vmul.f32 8.0, %v3402_v9  ;;  %v2186_v29 = vmul.f32 9.0, %v3404_v22 }
 0x153   :  { %v2058_v0 = vadd.f32 %v3402_v9, %v1946_v5  ;;  %v2130_v57 = vmul.f32 10000.0, %v2114_v53  ;;  %v2048_v55 = vmul.f32 1.442695, %v2018_v12  ;;  %v1978_v33 = vadd.f32 %v1962_v4, %v1866_v10  ;;  %v3025_v9 = vld [vmem:[%s5042_s1] ss:$0 sm:$0xff] }
 0x154   :  { %3419 = vpow2.f32 %v1936_v40 }
 0x155   :  { %v3406_v21 = vpop.eup %3405  ;;  %v2170_v31 = vadd.f32 %v3404_v22, %v2058_v0  ;;  %v2160_v63 = vmul.f32 1.442695, %v2130_v57  ;;  %v2090_v52 = vadd.f32 %v2074_v54, %v1978_v33 }
 0x156   :  { %v3408_v17 = vpop.eup %3407 }
 0x157   :  { %v3410_v23 = vpop.eup %3409  ;;  %3421 = vrcp.f32 %v2170_v31  ;;  %v1298_v42 = vadd.f32 %v3408_v17, %v3406_v21  ;;  %v2202_v43 = vadd.f32 %v2186_v29, %v2090_v52 }
 0x158   :  { %v3412_v36 = vpop.eup %3411  ;;  %v1410_v62 = vmul.f32 2.0, %v3410_v23  ;;  %3423 = vpow2.f32 %v2048_v55 }
 0x159   :  { %v3414_v24 = vpop.eup %3413  ;;  %v1394_v28 = vadd.f32 %v3410_v23, %v1298_v42  ;;  %v1522_v60 = vmul.f32 3.0, %v3412_v36  ;;  %3425 = vpow2.f32 %v2160_v63 }
 0x15a   :  { %v1426_v14 = vadd.f32 %v3408_v17, %v1410_v62  ;;  %v1634_v6 = vmul.f32 4.0, %v3414_v24  ;;  %v3416_v45 = vpop.eup %3415 }
 0x15b   :  { %v1506_v56 = vadd.f32 %v3412_v36, %v1394_v28  ;;  %v1746_v46 = vmul.f32 5.0, %v3416_v45 }
 0x15c   :  { %v1538_v47 = vadd.f32 %v1522_v60, %v1426_v14  ;;  %v3418_v11 = vpop.eup %3417 }
 0x15d   :  { %v1618_v50 = vadd.f32 %v3414_v24, %v1506_v56  ;;  %v1858_v15 = vmul.f32 6.0, %v3418_v11 }
 0x15e   :  { %v1650_v32 = vadd.f32 %v1634_v6, %v1538_v47  ;;  %v3420_v20 = vpop.eup %3419 }
 0x15f   :  { %v1730_v61 = vadd.f32 %v3416_v45, %v1618_v50  ;;  %v1970_v18 = vmul.f32 7.0, %v3420_v20 }
 0x160   :  { %v1762_v44 = vadd.f32 %v1746_v46, %v1650_v32 }
 0x161   :  { %v3422_v25 = vpop.eup %3421  ;;  %v1842_v7 = vadd.f32 %v3418_v11, %v1730_v61 }
 0x162   :  { %v3424_v19 = vpop.eup %3423  ;;  %v2225_v27 = vmul.f32 %v3422_v25, %v2202_v43  ;;  %v1874_v30 = vadd.f32 %v1858_v15, %v1762_v44 }
 0x163   :  { %v1954_v49 = vadd.f32 %v3420_v20, %v1842_v7  ;;  %v3426_v41 = vpop.eup %3425  ;;  %v2082_v37 = vmul.f32 8.0, %v3424_v19 }
 0x164   :  { %2558 = vmatmul.mubr.f32.vlgmr.msra.gmra.mrb[0].mxu1 %v2225_v27  ;;  %v1986_v59 = vadd.f32 %v1970_v18, %v1874_v30  ;;  %v2194_v2 = vmul.f32 9.0, %v3426_v41 }
 0x165   :  { %v2066_v13 = vadd.f32 %v3424_v19, %v1954_v49 }
 0x166   :  { %v2098_v34 = vadd.f32 %v2082_v37, %v1986_v59 }
 0x167   :  { %v2178_v16 = vadd.f32 %v3426_v41, %v2066_v13 }
 0x168   :  { %v2210_v8 = vadd.f32 %v2194_v2, %v2098_v34 }
 0x169   :  { %3427 = vrcp.f32 %v2178_v16 }
 0x173   :  { %v3428_v1 = vpop.eup %3427 }
 0x174   :  { %v2241_v35 = vmul.f32 %v3428_v1, %v2210_v8 }
 0x176   :  { %2838 = vmatmul.mubr.f32.vlgmr.msra.gmra.mrb[0].mxu0 %v2241_v35 }
 0x237   :  { %v2559_v26 = vpop.f32.mrb[0].mxu1 }
 0x238   :  { %v2561_v58 = vpop.f32.mrb[1].mxu1  ;;  %v3059_v3 = vadd.f32 %v3025_v9, %v2559_v26 }
 0x249   :  { %v2839_v48 = vpop.f32.mrb[0].mxu0 }
 0x24a   :  { %v3060_v22 = vadd.f32 %v3059_v3, %v2839_v48  ;;  %v2841_v38 = vpop.f32.mrb[1].mxu0 }
 0x24c   :  { %v3026_v51 = vmul.f32 -1.442695, %v3060_v22 }
 0x24e   :  { %3429 = vpow2.f32 %v3026_v51 }
 0x258   :  { %v3430_v5 = vpop.eup %3429 }
 0x259   :  { %v2846_v39 = vadd.f32 1.0, %v3430_v5 }
 0x25b   :  { %3431 = vrcp.f32 %v2846_v39 }
 0x265   :  { %v3432_v10 = vpop.eup %3431 }
 0x266   :  { %2850 = vst.msk [vmem:[#allocation5] sm:$0xff] %vm2849_vm0, %v3432_v10 }
 0x267   :  { %3466 = shalt.err (!%p3463_p12)
}
 0x268   :  { %s3467_s15 = scalar_lea.hbm %s5044_s3, 128 }
 0x269   :  { %p3468_p13 = scmp.ne.s32.totalorder %s5044_s3, %s3467_s15  ;;  %p3471_p0 = scmp.lt.u32.totalorder %s3467_s15, %s5044_s3 }
 0x26b   :  { %p3473_p1 = pnand %p3471_p0, %p3468_p13 }
 0x26d   :  { %3476 = shalt.err (!%p3473_p1)
}
 0x26e   :  { %2860 = dma.vmem_to_hbm [thread:$0]  %s2858_s12, 128, %s5044_s3, [#allocation4]  }
 0x26f   :  { %3479 = dma.done.wait [#allocation4], 128  }
 0x270   :  { %3480 = vsyncadd [#allocation4], 4294967168 }
 0x271   :  { %2864 = vsyncpa [#allocation3], 1 }
 0x272   :  { %2865 = vsyncpa [#allocation4], 1 }

</bundles_post_ra>
